<compile_context>
chip_gen: v7x
topology: tpu7x:2x2x1
jax: 0.10.0
libtpu: 0.0.40
codegen_flags: <defaults>
</compile_context>

<pallas_src>
import jax
import jax.numpy as jnp
from jax import lax
from jax.experimental import pallas as pl
from jax.experimental.pallas import tpu as pltpu


_GATE_PERM = (0, 1, 3, 2)   # PyTorch (i, f, g, o) -> kernel (i, f, o, g)


# ---------------------------------------------------------------------------
# Helpers
# ---------------------------------------------------------------------------
def _rup(x, m):
    return ((x + m - 1) // m) * m


def _pick_time_chunk(T1, Bblk, target_rows=256):
    """Largest divisor of T1 whose (ct*Bblk, Hp) slab stays a modest matmul."""
    best = 1
    for ct in range(1, T1 + 1):
        if T1 % ct == 0 and ct * Bblk <= max(target_rows, Bblk):
            best = ct
    return best


def _pick_tile_v(v_pad, rows):
    """Largest lane-dense V tile whose double-buffered f32 out block is small."""
    for t in (2048, 1024, 512, 256, 128):
        if v_pad % t == 0 and rows * t * 4 * 2 <= (16 << 20):
            return t
    return 128


def _pad_gate_weight(w, H, H_pad):
    """(L, In, 4H) [i,f,g,o] -> (L, H_pad, 4*H_pad) [i,f,o,g], per-gate padded."""
    L, In, _ = w.shape
    w4 = w.reshape(L, In, 4, H)
    w4 = jnp.take(w4, jnp.array(_GATE_PERM), axis=2)
    w4 = jnp.pad(w4, ((0, 0), (0, H_pad - In), (0, 0), (0, H_pad - H)))
    return w4.reshape(L, H_pad, 4 * H_pad)


def _pad_gate_bias(b, H, H_pad):
    """(L, 4H) [i,f,g,o] -> (L, 1, 4*H_pad) [i,f,o,g]."""
    L = b.shape[0]
    b4 = b.reshape(L, 4, H)
    b4 = jnp.take(b4, jnp.array(_GATE_PERM), axis=1)
    b4 = jnp.pad(b4, ((0, 0), (0, 0), (0, H_pad - H)))
    return b4.reshape(L, 1, 4 * H_pad)


# ---------------------------------------------------------------------------
# Kernel 1: multi-layer LSTM.  grid = (batch blocks [parallel], layers
# [arbitrary]).  The output block (T1, Bblk, Hp) has a constant block index
# across layers, so it stays resident in VMEM and carries the per-layer
# sequence from one layer to the next.
# ---------------------------------------------------------------------------
def _lstm_layers_kernel(x_hbm, wih_ref, whh_ref, b_ref, seq_ref,
                        gates_buf, h_buf, c_buf, copy_sem):
    b_idx = pl.program_id(0)
    layer = pl.program_id(1)
    T1, Bblk, Hp = seq_ref.shape

    # Layer 0: DMA this batch block's inputs from HBM into the resident seq
    # block (x never occupies VMEM beyond this one copy).
    @pl.when(layer == 0)
    def _():
        cp = pltpu.make_async_copy(x_hbm.at[b_idx], seq_ref, copy_sem)
        cp.start()
        cp.wait()

    wih = wih_ref[0]          # (Hp, 4*Hp)  bf16  (current layer only, streamed)
    whh = whh_ref[0]          # (Hp, 4*Hp)  bf16
    bias = b_ref[0]           # (1,  4*Hp)  f32   (b_ih + b_hh)

    # Hoisted input projection + bias, streamed into the gates scratch in
    # time-chunks so no large f32 intermediate stays live in vregs.
    ct = _pick_time_chunk(T1, Bblk)
    n_chunks = T1 // ct

    def proj_chunk(c, carry):
        xin = seq_ref[pl.ds(c * ct, ct)].reshape(ct * Bblk, Hp)
        g = jnp.dot(xin, wih, preferred_element_type=jnp.float32) + bias
        gates_buf[pl.ds(c * ct, ct)] = g.reshape(ct, Bblk, 4 * Hp)
        return carry

    lax.fori_loop(0, n_chunks, proj_chunk, 0, unroll=True)

    h_buf[...] = jnp.zeros_like(h_buf)
    c_buf[...] = jnp.zeros_like(c_buf)

    # Sequential recurrence: only (Bblk, Hp) @ (Hp, 4Hp) + gate math per step.
    # Gate order (i, f, o, g): one sigmoid over a contiguous (Bblk, 3*Hp)
    # slice, one tanh over (Bblk, Hp).  All slices are lane-aligned.
    def step(t, carry):
        g = gates_buf[t] + jnp.dot(h_buf[...], whh,
                                   preferred_element_type=jnp.float32)
        sig = jax.nn.sigmoid(g[:, :3 * Hp])
        i = sig[:, 0 * Hp:1 * Hp]
        f = sig[:, 1 * Hp:2 * Hp]
        o = sig[:, 2 * Hp:3 * Hp]
        gg = jnp.tanh(g[:, 3 * Hp:4 * Hp])
        c = f * c_buf[...] + i * gg
        h = (o * jnp.tanh(c)).astype(jnp.bfloat16)
        c_buf[...] = c
        h_buf[...] = h
        seq_ref[t] = h                     # next layer's input / final output
        return carry

    unroll = True if T1 <= 16 else 8
    lax.fori_loop(0, T1, step, 0, unroll=unroll)


# ---------------------------------------------------------------------------
# Kernel 2: vocab projection, flattened to 2-D and tiled over V ("parallel").
# ---------------------------------------------------------------------------
def _vocab_proj_kernel(seq_ref, wout_ref, bout_ref, out_ref):
    out_ref[...] = (jnp.dot(seq_ref[...], wout_ref[...],
                            preferred_element_type=jnp.float32)
                    + bout_ref[...])


# ---------------------------------------------------------------------------
# Wrapper
# ---------------------------------------------------------------------------
def rnn_decoder_forward(params, features, captions):
    """features: (B, E) f32, captions: (B, T) int32 -> logits (B, T+1, V)."""
    embed_tbl = params["embed"]                          # (V, E)
    emb = jnp.take(embed_tbl, captions, axis=0)          # (B, T, E)  glue gather
    x = jnp.concatenate([features[:, None, :], emb], axis=1)    # (B, T1, E)
    x_tm = jnp.transpose(x, (1, 0, 2)).astype(jnp.float32)      # (T1, B, E)

    T1, B, E = x_tm.shape
    L = params["wih"].shape[0]
    H = params["whh"].shape[1]
    V = params["wout"].shape[1]
    assert E == H, "layer weights are stacked; requires embed_size == hidden_size"

    # (8,128)-aligned in-kernel shapes.  Zero-padding is exact for the LSTM:
    # padded gate pre-activations are 0 -> padded h/c lanes stay exactly 0.
    Hp = _rup(H, 128)
    Vp = _rup(V, 512) if V >= 512 else _rup(V, 128)
    if B > 8:                               # enough batch: split across 2 TCs (v7x)
        Bp = _rup(B, 16)
        nb = 2
    else:
        Bp = _rup(B, 8)
        nb = 1
    Bblk = Bp // nb

    # x laid out (nb, T1, Bblk, Hp) bf16 so each batch block is one leading-axis
    # DMA slab.
    x_p = jnp.pad(x_tm, ((0, 0), (0, Bp - B), (0, Hp - E)))
    x_p = x_p.reshape(T1, nb, Bblk, Hp).transpose(1, 0, 2, 3).astype(jnp.bfloat16)

    wih_p = _pad_gate_weight(params["wih"], H, Hp).astype(jnp.bfloat16)
    whh_p = _pad_gate_weight(params["whh"], H, Hp).astype(jnp.bfloat16)
    b_p = _pad_gate_bias(params["b"], H, Hp)                             # f32
    wout_p = jnp.pad(params["wout"],
                     ((0, Hp - H), (0, Vp - V))).astype(jnp.bfloat16)
    bout_p = jnp.pad(params["bout"], ((0, 0), (0, Vp - V)))              # f32
    # TODO(synk): optionally quantize W_out to fp8 (v7x) / int8+scale (v5e/v6e)
    # to halve the HBM-bound weight stream; needs an accuracy re-validation.

    # ---- LSTM stack: grid (batch blocks, layers), weights streamed per layer
    lstm_vmem = (
        2 * T1 * Bblk * Hp * 2                 # resident seq block (bf16)
        + 2 * 2 * Hp * 4 * Hp * 2              # W_ih + W_hh (bf16, double-buffered)
        + 2 * 4 * Hp * 4                       # bias
        + T1 * Bblk * 4 * Hp * 4               # hoisted gates scratch (f32)
        + Bblk * Hp * (2 + 4)                  # h (bf16) + c (f32)
    )
    lstm_vmem = min(max(int(lstm_vmem * 1.25) + (2 << 20), 16 << 20), 96 << 20)

    seq = pl.pallas_call(
        _lstm_layers_kernel,
        out_shape=jax.ShapeDtypeStruct((T1, Bp, Hp), jnp.bfloat16),
        grid_spec=pltpu.PrefetchScalarGridSpec(
            num_scalar_prefetch=0,
            grid=(nb, L),
            in_specs=[
                pl.BlockSpec(memory_space=pl.ANY),                       # x (HBM)
                pl.BlockSpec((1, Hp, 4 * Hp), lambda b, l: (l, 0, 0)),   # W_ih[l]
                pl.BlockSpec((1, Hp, 4 * Hp), lambda b, l: (l, 0, 0)),   # W_hh[l]
                pl.BlockSpec((1, 1, 4 * Hp), lambda b, l: (l, 0, 0)),    # b[l]
            ],
            out_specs=pl.BlockSpec((T1, Bblk, Hp), lambda b, l: (0, b, 0)),
            scratch_shapes=[
                pltpu.VMEM((T1, Bblk, 4 * Hp), jnp.float32),   # hoisted gates
                pltpu.VMEM((Bblk, Hp), jnp.bfloat16),          # h state
                pltpu.VMEM((Bblk, Hp), jnp.float32),           # c state
                pltpu.SemaphoreType.DMA(()),                   # x -> seq copy
            ],
        ),
        compiler_params=pltpu.CompilerParams(
            dimension_semantics=("parallel", "arbitrary"),
            vmem_limit_bytes=lstm_vmem),
    )(x_p, wih_p, whh_p, b_p)

    # ---- Vocab projection: transpose the SMALL hidden tensor (not the big
    # logits), then a single (rows, Hp) @ (Hp, Vp) matmul tiled over V. -------
    rows = Bp * T1
    seq_bt = jnp.transpose(seq, (1, 0, 2)).reshape(rows, Hp)      # bf16, cheap
    tile_v = _pick_tile_v(Vp, rows)
    proj_vmem = (
        2 * rows * Hp * 2            # hidden block (bf16)
        + 2 * Hp * tile_v * 2        # W_out tile (bf16, double-buffered)
        + 2 * tile_v * 4             # bias tile
        + 2 * rows * tile_v * 4      # logits tile (f32, double-buffered)
    )
    proj_vmem = min(max(int(proj_vmem * 1.25) + (2 << 20), 16 << 20), 96 << 20)

    logits2d = pl.pallas_call(
        _vocab_proj_kernel,
        out_shape=jax.ShapeDtypeStruct((rows, Vp), jnp.float32),
        grid_spec=pltpu.PrefetchScalarGridSpec(
            num_scalar_prefetch=0,
            grid=(Vp // tile_v,),
            in_specs=[
                pl.BlockSpec((rows, Hp), lambda v: (0, 0)),           # hiddens
                pl.BlockSpec((Hp, tile_v), lambda v: (0, v)),         # W_out
                pl.BlockSpec((1, tile_v), lambda v: (0, v)),          # b_out
            ],
            out_specs=pl.BlockSpec((rows, tile_v), lambda v: (0, v)),
        ),
        compiler_params=pltpu.CompilerParams(
            dimension_semantics=("parallel",),
            vmem_limit_bytes=proj_vmem),
    )(seq_bt, wout_p, bout_p)

    # Already batch-major: just reshape + slice off padding (no big transpose).
    return logits2d.reshape(Bp, T1, Vp)[:B, :, :V]


# ---------------------------------------------------------------------------
# Pure-JAX reference mirroring PyTorch nn.LSTM / nn.Linear semantics (f32).
# ---------------------------------------------------------------------------
def reference_forward(params, features, captions):
    H = params["whh"].shape[1]
    emb = jnp.take(params["embed"], captions, axis=0)
    x = jnp.concatenate([features[:, None, :], emb], axis=1)     # (B, T1, E)
    seq = x
    for layer in range(params["wih"].shape[0]):
        wih, whh, b = params["wih"][layer], params["whh"][layer], params["b"][layer]

        def cell(carry, x_t):
            h, c = carry
            gates = x_t @ wih + h @ whh + b
            i = jax.nn.sigmoid(gates[:, 0 * H:1 * H])
            f = jax.nn.sigmoid(gates[:, 1 * H:2 * H])
            g = jnp.tanh(gates[:, 2 * H:3 * H])
            o = jax.nn.sigmoid(gates[:, 3 * H:4 * H])
            c = f * c + i * g
            h = o * jnp.tanh(c)
            return (h, c), h

        B = seq.shape[0]
        init = (jnp.zeros((B, H), jnp.float32), jnp.zeros((B, H), jnp.float32))
        _, ys = lax.scan(cell, init, jnp.transpose(seq, (1, 0, 2)))
        seq = jnp.transpose(ys, (1, 0, 2))
    return seq @ params["wout"] + params["bout"][0]


def init_params(key, embed_size, hidden_size, vocab_size, num_layers):
    assert embed_size == hidden_size, "this script stacks layer weights; pick E == H"
    ks = jax.random.split(key, 8)
    k = 1.0 / jnp.sqrt(hidden_size)
    H, E, V, L = hidden_size, embed_size, vocab_size, num_layers
    return {
        "embed": jax.random.normal(ks[0], (V, E), jnp.float32),
        "wih": jax.random.uniform(ks[1], (L, E, 4 * H), jnp.float32, -k, k),
        "whh": jax.random.uniform(ks[2], (L, H, 4 * H), jnp.float32, -k, k),
        "b": (jax.random.uniform(ks[3], (L, 4 * H), jnp.float32, -k, k)
              + jax.random.uniform(ks[4], (L, 4 * H), jnp.float32, -k, k)),
        "wout": jax.random.uniform(ks[5], (H, V), jnp.float32, -k, k),
        "bout": jax.random.uniform(ks[6], (1, V), jnp.float32, -k, k),
    }


if __name__ == "__main__":
    # TODO(synk): the PyTorch `sample()` method (top-k multinomial decode loop)
    # is autoregressive control flow and is not implemented here; only forward().
    B, T, E, H, V, L = 2, 8, 32, 32, 64, 2
    key = jax.random.PRNGKey(0)
    kp, kf, kc = jax.random.split(key, 3)

    params = init_params(kp, E, H, V, L)
    features = jax.random.normal(kf, (B, E), jnp.float32)
    captions = jax.random.randint(kc, (B, T), 0, V, jnp.int32)

    out = rnn_decoder_forward(params, features, captions)
    out = jax.block_until_ready(out)
    assert out.shape == (B, T + 1, V), out.shape

    ref = reference_forward(params, features, captions)
    max_err = float(jnp.max(jnp.abs(out - ref)))
    # bf16 weights / matmul inputs (f32 accumulation) => small deviation vs f32.
    assert max_err < 5e-2, f"mismatch vs reference: {max_err}"

    print("KERNEL_OK")
</pallas_src>

<mosaic_0001>
module attributes {stable_mosaic.version = 11 : i64} {
  func.func @_lstm_layers_kernel(%arg0: i32, %arg1: i32, %arg2: memref<1x9x8x128xbf16, #tpu.memory_space<any>>, %arg3: memref<1x128x512xbf16, #tpu.memory_space<vmem>>, %arg4: memref<1x128x512xbf16, #tpu.memory_space<vmem>>, %arg5: memref<1x1x512xf32, #tpu.memory_space<vmem>>, %arg6: memref<9x8x128xbf16, #tpu.memory_space<vmem>>, %arg7: memref<9x8x512xf32, #tpu.memory_space<vmem>>, %arg8: memref<8x128xbf16, #tpu.memory_space<vmem>>, %arg9: memref<8x128xf32, #tpu.memory_space<vmem>>, %arg10: memref<!tpu.dma_semaphore, #tpu.memory_space<semaphore_mem>>) attributes {dimension_semantics = [#tpu.dimension_semantics<parallel>, #tpu.dimension_semantics<arbitrary>], iteration_bounds = array<i64: 1, 2>, scalar_prefetch = 0 : i64, scratch_operands = 4 : i64, tpu.core_type = #tpu.core_type<tc>, window_params = [{}, {transform_indices = @transform_1, window_bounds = array<i64: 1, 128, 512>}, {transform_indices = @transform_2, window_bounds = array<i64: 1, 128, 512>}, {transform_indices = @transform_3, window_bounds = array<i64: 1, 1, 512>}, {transform_indices = @transform_4, window_bounds = array<i64: 9, 8, 128>}]} {
    %c0_i32 = arith.constant 0 : i32
    %0 = arith.cmpi eq, %arg1, %c0_i32 : i32
    %1 = arith.extui %0 : i1 to i32
    %c0_i32_0 = arith.constant 0 : i32
    %2 = arith.cmpi ne, %1, %c0_i32_0 : i32
    scf.if %2 {
      %c0_i32_150 = arith.constant 0 : i32
      %c0_i32_151 = arith.constant 0 : i32
      %c0_i32_152 = arith.constant 0 : i32
      %294 = tpu.memref_slice %arg2[%arg0, %c0_i32_150, %c0_i32_151, %c0_i32_152] : memref<1x9x8x128xbf16, #tpu.memory_space<any>> -> memref<1x9x8x128xbf16, #tpu.memory_space<any>>
      %295 = tpu.memref_squeeze %294 : memref<1x9x8x128xbf16, #tpu.memory_space<any>> -> memref<9x8x128xbf16, #tpu.memory_space<any>>
      tpu.enqueue_dma source(%295 : memref<9x8x128xbf16, #tpu.memory_space<any>>) target(%arg6 : memref<9x8x128xbf16, #tpu.memory_space<vmem>>) target_semaphore(%arg10 : memref<!tpu.dma_semaphore, #tpu.memory_space<semaphore_mem>>)
      %c0_i32_153 = arith.constant 0 : i32
      %c0_i32_154 = arith.constant 0 : i32
      %c0_i32_155 = arith.constant 0 : i32
      %296 = tpu.memref_slice %arg2[%arg0, %c0_i32_153, %c0_i32_154, %c0_i32_155] : memref<1x9x8x128xbf16, #tpu.memory_space<any>> -> memref<1x9x8x128xbf16, #tpu.memory_space<any>>
      %297 = tpu.memref_squeeze %296 : memref<1x9x8x128xbf16, #tpu.memory_space<any>> -> memref<9x8x128xbf16, #tpu.memory_space<any>>
      tpu.wait_dma2 semaphore(%arg10 : memref<!tpu.dma_semaphore, #tpu.memory_space<semaphore_mem>>) src(%297 : memref<9x8x128xbf16, #tpu.memory_space<any>>) dst(%arg6 : memref<9x8x128xbf16, #tpu.memory_space<vmem>>)
    } else {
    }
    %c0 = arith.constant 0 : index
    %c0_1 = arith.constant 0 : index
    %c0_2 = arith.constant 0 : index
    %3 = vector.load %arg3[%c0, %c0_1, %c0_2] : memref<1x128x512xbf16, #tpu.memory_space<vmem>>, vector<1x128x512xbf16>
    %4 = vector.shape_cast %3 : vector<1x128x512xbf16> to vector<128x512xbf16>
    %c0_3 = arith.constant 0 : index
    %c0_4 = arith.constant 0 : index
    %c0_5 = arith.constant 0 : index
    %5 = vector.load %arg4[%c0_3, %c0_4, %c0_5] : memref<1x128x512xbf16, #tpu.memory_space<vmem>>, vector<1x128x512xbf16>
    %6 = vector.shape_cast %5 : vector<1x128x512xbf16> to vector<128x512xbf16>
    %c0_6 = arith.constant 0 : index
    %c0_7 = arith.constant 0 : index
    %c0_8 = arith.constant 0 : index
    %7 = vector.load %arg5[%c0_6, %c0_7, %c0_8] : memref<1x1x512xf32, #tpu.memory_space<vmem>>, vector<1x1x512xf32>
    %8 = vector.shape_cast %7 : vector<1x1x512xf32> to vector<1x512xf32>
    %c0_i32_9 = arith.constant 0 : i32
    %c9_i32 = arith.constant 9 : i32
    %9 = arith.muli %c0_i32_9, %c9_i32 : i32
    %10 = arith.index_cast %9 : i32 to index
    %c0_10 = arith.constant 0 : index
    %c0_11 = arith.constant 0 : index
    %11 = vector.load %arg6[%10, %c0_10, %c0_11] : memref<9x8x128xbf16, #tpu.memory_space<vmem>>, vector<9x8x128xbf16>
    %12 = vector.shape_cast %11 : vector<9x8x128xbf16> to vector<72x128xbf16>
    %cst = arith.constant dense<0.000000e+00> : vector<72x512xf32>
    %13 = tpu.matmul %12, %4, %cst {dimension_numbers = #tpu.dot_dimension_numbers<[1], [0], [0], [1], [0, 0, 1, 1], [], []>} : vector<72x128xbf16>, vector<128x512xbf16>, vector<72x512xf32> -> vector<72x512xf32>
    %14 = vector.broadcast %8 : vector<1x512xf32> to vector<72x512xf32>
    %15 = arith.addf %13, %14 : vector<72x512xf32>
    %16 = vector.shape_cast %15 : vector<72x512xf32> to vector<9x8x512xf32>
    %c9_i32_12 = arith.constant 9 : i32
    %17 = arith.muli %c0_i32_9, %c9_i32_12 : i32
    %18 = arith.index_cast %17 : i32 to index
    %c0_13 = arith.constant 0 : index
    %c0_14 = arith.constant 0 : index
    %19 = vector.load %arg7[%18, %c0_13, %c0_14] : memref<9x8x512xf32, #tpu.memory_space<vmem>>, vector<9x8x512xf32>
    tpu.vector_store %arg7[%18, %c0_13, %c0_14], %16 {strides = array<i32>} : memref<9x8x512xf32, #tpu.memory_space<vmem>>, vector<9x8x512xf32>,
    %c1_i32 = arith.constant 1 : i32
    %cst_15 = arith.constant 0.000000e+00 : bf16
    %20 = vector.broadcast %cst_15 : bf16 to vector<8x128xbf16>
    %c0_16 = arith.constant 0 : index
    %c0_17 = arith.constant 0 : index
    %21 = vector.load %arg8[%c0_16, %c0_17] : memref<8x128xbf16, #tpu.memory_space<vmem>>, vector<8x128xbf16>
    tpu.vector_store %arg8[%c0_16, %c0_17], %20 {strides = array<i32>} : memref<8x128xbf16, #tpu.memory_space<vmem>>, vector<8x128xbf16>,
    %cst_18 = arith.constant 0.000000e+00 : f32
    %22 = vector.broadcast %cst_18 : f32 to vector<8x128xf32>
    %c0_19 = arith.constant 0 : index
    %c0_20 = arith.constant 0 : index
    %23 = vector.load %arg9[%c0_19, %c0_20] : memref<8x128xf32, #tpu.memory_space<vmem>>, vector<8x128xf32>
    tpu.vector_store %arg9[%c0_19, %c0_20], %22 {strides = array<i32>} : memref<8x128xf32, #tpu.memory_space<vmem>>, vector<8x128xf32>,
    %c0_i32_21 = arith.constant 0 : i32
    %24 = arith.index_cast %c0_i32_21 : i32 to index
    %c0_22 = arith.constant 0 : index
    %c0_23 = arith.constant 0 : index
    %25 = vector.load %arg7[%24, %c0_22, %c0_23] : memref<9x8x512xf32, #tpu.memory_space<vmem>>, vector<1x8x512xf32>
    %26 = vector.shape_cast %25 : vector<1x8x512xf32> to vector<8x512xf32>
    %c0_24 = arith.constant 0 : index
    %c0_25 = arith.constant 0 : index
    %27 = vector.load %arg8[%c0_24, %c0_25] : memref<8x128xbf16, #tpu.memory_space<vmem>>, vector<8x128xbf16>
    %cst_26 = arith.constant dense<0.000000e+00> : vector<8x512xf32>
    %28 = tpu.matmul %27, %6, %cst_26 {dimension_numbers = #tpu.dot_dimension_numbers<[1], [0], [0], [1], [0, 0, 1, 1], [], []>} : vector<8x128xbf16>, vector<128x512xbf16>, vector<8x512xf32> -> vector<8x512xf32>
    %29 = arith.addf %26, %28 : vector<8x512xf32>
    %30 = vector.extract_strided_slice %29 {offsets = [0, 0], sizes = [8, 384], strides = [1, 1]} : vector<8x512xf32> to vector<8x384xf32>
    %31 = arith.negf %30 : vector<8x384xf32>
    %32 = math.exp %31 : vector<8x384xf32>
    %cst_27 = arith.constant 1.000000e+00 : f32
    %33 = vector.broadcast %cst_27 : f32 to vector<8x384xf32>
    %34 = arith.addf %33, %32 : vector<8x384xf32>
    %35 = arith.divf %33, %34 : vector<8x384xf32>
    %36 = vector.extract_strided_slice %35 {offsets = [0, 0], sizes = [8, 128], strides = [1, 1]} : vector<8x384xf32> to vector<8x128xf32>
    %37 = vector.extract_strided_slice %35 {offsets = [0, 128], sizes = [8, 128], strides = [1, 1]} : vector<8x384xf32> to vector<8x128xf32>
    %38 = vector.extract_strided_slice %35 {offsets = [0, 256], sizes = [8, 128], strides = [1, 1]} : vector<8x384xf32> to vector<8x128xf32>
    %39 = vector.extract_strided_slice %29 {offsets = [0, 384], sizes = [8, 128], strides = [1, 1]} : vector<8x512xf32> to vector<8x128xf32>
    %40 = math.tanh %39 : vector<8x128xf32>
    %c0_28 = arith.constant 0 : index
    %c0_29 = arith.constant 0 : index
    %41 = vector.load %arg9[%c0_28, %c0_29] : memref<8x128xf32, #tpu.memory_space<vmem>>, vector<8x128xf32>
    %42 = arith.mulf %37, %41 : vector<8x128xf32>
    %43 = arith.mulf %36, %40 : vector<8x128xf32>
    %44 = arith.addf %42, %43 : vector<8x128xf32>
    %45 = math.tanh %44 : vector<8x128xf32>
    %46 = arith.mulf %38, %45 : vector<8x128xf32>
    %47 = arith.truncf %46 : vector<8x128xf32> to vector<8x128xbf16>
    %c0_30 = arith.constant 0 : index
    %c0_31 = arith.constant 0 : index
    %48 = vector.load %arg9[%c0_30, %c0_31] : memref<8x128xf32, #tpu.memory_space<vmem>>, vector<8x128xf32>
    tpu.vector_store %arg9[%c0_30, %c0_31], %44 {strides = array<i32>} : memref<8x128xf32, #tpu.memory_space<vmem>>, vector<8x128xf32>,
    %c0_32 = arith.constant 0 : index
    %c0_33 = arith.constant 0 : index
    %49 = vector.load %arg8[%c0_32, %c0_33] : memref<8x128xbf16, #tpu.memory_space<vmem>>, vector<8x128xbf16>
    tpu.vector_store %arg8[%c0_32, %c0_33], %47 {strides = array<i32>} : memref<8x128xbf16, #tpu.memory_space<vmem>>, vector<8x128xbf16>,
    %50 = arith.index_cast %c0_i32_21 : i32 to index
    %c0_34 = arith.constant 0 : index
    %c0_35 = arith.constant 0 : index
    %51 = vector.load %arg6[%50, %c0_34, %c0_35] : memref<9x8x128xbf16, #tpu.memory_space<vmem>>, vector<1x8x128xbf16>
    %52 = vector.shape_cast %51 : vector<1x8x128xbf16> to vector<8x128xbf16>
    %53 = vector.shape_cast %47 : vector<8x128xbf16> to vector<1x8x128xbf16>
    tpu.vector_store %arg6[%50, %c0_34, %c0_35], %53 {strides = array<i32>} : memref<9x8x128xbf16, #tpu.memory_space<vmem>>, vector<1x8x128xbf16>,
    %c1_i32_36 = arith.constant 1 : i32
    %54 = arith.index_cast %c1_i32_36 : i32 to index
    %c0_37 = arith.constant 0 : index
    %c0_38 = arith.constant 0 : index
    %55 = vector.load %arg7[%54, %c0_37, %c0_38] : memref<9x8x512xf32, #tpu.memory_space<vmem>>, vector<1x8x512xf32>
    %56 = vector.shape_cast %55 : vector<1x8x512xf32> to vector<8x512xf32>
    %c0_39 = arith.constant 0 : index
    %c0_40 = arith.constant 0 : index
    %57 = vector.load %arg8[%c0_39, %c0_40] : memref<8x128xbf16, #tpu.memory_space<vmem>>, vector<8x128xbf16>
    %cst_41 = arith.constant dense<0.000000e+00> : vector<8x512xf32>
    %58 = tpu.matmul %57, %6, %cst_41 {dimension_numbers = #tpu.dot_dimension_numbers<[1], [0], [0], [1], [0, 0, 1, 1], [], []>} : vector<8x128xbf16>, vector<128x512xbf16>, vector<8x512xf32> -> vector<8x512xf32>
    %59 = arith.addf %56, %58 : vector<8x512xf32>
    %60 = vector.extract_strided_slice %59 {offsets = [0, 0], sizes = [8, 384], strides = [1, 1]} : vector<8x512xf32> to vector<8x384xf32>
    %61 = arith.negf %60 : vector<8x384xf32>
    %62 = math.exp %61 : vector<8x384xf32>
    %cst_42 = arith.constant 1.000000e+00 : f32
    %63 = vector.broadcast %cst_42 : f32 to vector<8x384xf32>
    %64 = arith.addf %63, %62 : vector<8x384xf32>
    %65 = arith.divf %63, %64 : vector<8x384xf32>
    %66 = vector.extract_strided_slice %65 {offsets = [0, 0], sizes = [8, 128], strides = [1, 1]} : vector<8x384xf32> to vector<8x128xf32>
    %67 = vector.extract_strided_slice %65 {offsets = [0, 128], sizes = [8, 128], strides = [1, 1]} : vector<8x384xf32> to vector<8x128xf32>
    %68 = vector.extract_strided_slice %65 {offsets = [0, 256], sizes = [8, 128], strides = [1, 1]} : vector<8x384xf32> to vector<8x128xf32>
    %69 = vector.extract_strided_slice %59 {offsets = [0, 384], sizes = [8, 128], strides = [1, 1]} : vector<8x512xf32> to vector<8x128xf32>
    %70 = math.tanh %69 : vector<8x128xf32>
    %c0_43 = arith.constant 0 : index
    %c0_44 = arith.constant 0 : index
    %71 = vector.load %arg9[%c0_43, %c0_44] : memref<8x128xf32, #tpu.memory_space<vmem>>, vector<8x128xf32>
    %72 = arith.mulf %67, %71 : vector<8x128xf32>
    %73 = arith.mulf %66, %70 : vector<8x128xf32>
    %74 = arith.addf %72, %73 : vector<8x128xf32>
    %75 = math.tanh %74 : vector<8x128xf32>
    %76 = arith.mulf %68, %75 : vector<8x128xf32>
    %77 = arith.truncf %76 : vector<8x128xf32> to vector<8x128xbf16>
    %c0_45 = arith.constant 0 : index
    %c0_46 = arith.constant 0 : index
    %78 = vector.load %arg9[%c0_45, %c0_46] : memref<8x128xf32, #tpu.memory_space<vmem>>, vector<8x128xf32>
    tpu.vector_store %arg9[%c0_45, %c0_46], %74 {strides = array<i32>} : memref<8x128xf32, #tpu.memory_space<vmem>>, vector<8x128xf32>,
    %c0_47 = arith.constant 0 : index
    %c0_48 = arith.constant 0 : index
    %79 = vector.load %arg8[%c0_47, %c0_48] : memref<8x128xbf16, #tpu.memory_space<vmem>>, vector<8x128xbf16>
    tpu.vector_store %arg8[%c0_47, %c0_48], %77 {strides = array<i32>} : memref<8x128xbf16, #tpu.memory_space<vmem>>, vector<8x128xbf16>,
    %80 = arith.index_cast %c1_i32_36 : i32 to index
    %c0_49 = arith.constant 0 : index
    %c0_50 = arith.constant 0 : index
    %81 = vector.load %arg6[%80, %c0_49, %c0_50] : memref<9x8x128xbf16, #tpu.memory_space<vmem>>, vector<1x8x128xbf16>
    %82 = vector.shape_cast %81 : vector<1x8x128xbf16> to vector<8x128xbf16>
    %83 = vector.shape_cast %77 : vector<8x128xbf16> to vector<1x8x128xbf16>
    tpu.vector_store %arg6[%80, %c0_49, %c0_50], %83 {strides = array<i32>} : memref<9x8x128xbf16, #tpu.memory_space<vmem>>, vector<1x8x128xbf16>,
    %c2_i32 = arith.constant 2 : i32
    %84 = arith.index_cast %c2_i32 : i32 to index
    %c0_51 = arith.constant 0 : index
    %c0_52 = arith.constant 0 : index
    %85 = vector.load %arg7[%84, %c0_51, %c0_52] : memref<9x8x512xf32, #tpu.memory_space<vmem>>, vector<1x8x512xf32>
    %86 = vector.shape_cast %85 : vector<1x8x512xf32> to vector<8x512xf32>
    %c0_53 = arith.constant 0 : index
    %c0_54 = arith.constant 0 : index
    %87 = vector.load %arg8[%c0_53, %c0_54] : memref<8x128xbf16, #tpu.memory_space<vmem>>, vector<8x128xbf16>
    %cst_55 = arith.constant dense<0.000000e+00> : vector<8x512xf32>
    %88 = tpu.matmul %87, %6, %cst_55 {dimension_numbers = #tpu.dot_dimension_numbers<[1], [0], [0], [1], [0, 0, 1, 1], [], []>} : vector<8x128xbf16>, vector<128x512xbf16>, vector<8x512xf32> -> vector<8x512xf32>
    %89 = arith.addf %86, %88 : vector<8x512xf32>
    %90 = vector.extract_strided_slice %89 {offsets = [0, 0], sizes = [8, 384], strides = [1, 1]} : vector<8x512xf32> to vector<8x384xf32>
    %91 = arith.negf %90 : vector<8x384xf32>
    %92 = math.exp %91 : vector<8x384xf32>
    %cst_56 = arith.constant 1.000000e+00 : f32
    %93 = vector.broadcast %cst_56 : f32 to vector<8x384xf32>
    %94 = arith.addf %93, %92 : vector<8x384xf32>
    %95 = arith.divf %93, %94 : vector<8x384xf32>
    %96 = vector.extract_strided_slice %95 {offsets = [0, 0], sizes = [8, 128], strides = [1, 1]} : vector<8x384xf32> to vector<8x128xf32>
    %97 = vector.extract_strided_slice %95 {offsets = [0, 128], sizes = [8, 128], strides = [1, 1]} : vector<8x384xf32> to vector<8x128xf32>
    %98 = vector.extract_strided_slice %95 {offsets = [0, 256], sizes = [8, 128], strides = [1, 1]} : vector<8x384xf32> to vector<8x128xf32>
    %99 = vector.extract_strided_slice %89 {offsets = [0, 384], sizes = [8, 128], strides = [1, 1]} : vector<8x512xf32> to vector<8x128xf32>
    %100 = math.tanh %99 : vector<8x128xf32>
    %c0_57 = arith.constant 0 : index
    %c0_58 = arith.constant 0 : index
    %101 = vector.load %arg9[%c0_57, %c0_58] : memref<8x128xf32, #tpu.memory_space<vmem>>, vector<8x128xf32>
    %102 = arith.mulf %97, %101 : vector<8x128xf32>
    %103 = arith.mulf %96, %100 : vector<8x128xf32>
    %104 = arith.addf %102, %103 : vector<8x128xf32>
    %105 = math.tanh %104 : vector<8x128xf32>
    %106 = arith.mulf %98, %105 : vector<8x128xf32>
    %107 = arith.truncf %106 : vector<8x128xf32> to vector<8x128xbf16>
    %c0_59 = arith.constant 0 : index
    %c0_60 = arith.constant 0 : index
    %108 = vector.load %arg9[%c0_59, %c0_60] : memref<8x128xf32, #tpu.memory_space<vmem>>, vector<8x128xf32>
    tpu.vector_store %arg9[%c0_59, %c0_60], %104 {strides = array<i32>} : memref<8x128xf32, #tpu.memory_space<vmem>>, vector<8x128xf32>,
    %c0_61 = arith.constant 0 : index
    %c0_62 = arith.constant 0 : index
    %109 = vector.load %arg8[%c0_61, %c0_62] : memref<8x128xbf16, #tpu.memory_space<vmem>>, vector<8x128xbf16>
    tpu.vector_store %arg8[%c0_61, %c0_62], %107 {strides = array<i32>} : memref<8x128xbf16, #tpu.memory_space<vmem>>, vector<8x128xbf16>,
    %110 = arith.index_cast %c2_i32 : i32 to index
    %c0_63 = arith.constant 0 : index
    %c0_64 = arith.constant 0 : index
    %111 = vector.load %arg6[%110, %c0_63, %c0_64] : memref<9x8x128xbf16, #tpu.memory_space<vmem>>, vector<1x8x128xbf16>
    %112 = vector.shape_cast %111 : vector<1x8x128xbf16> to vector<8x128xbf16>
    %113 = vector.shape_cast %107 : vector<8x128xbf16> to vector<1x8x128xbf16>
    tpu.vector_store %arg6[%110, %c0_63, %c0_64], %113 {strides = array<i32>} : memref<9x8x128xbf16, #tpu.memory_space<vmem>>, vector<1x8x128xbf16>,
    %c3_i32 = arith.constant 3 : i32
    %114 = arith.index_cast %c3_i32 : i32 to index
    %c0_65 = arith.constant 0 : index
    %c0_66 = arith.constant 0 : index
    %115 = vector.load %arg7[%114, %c0_65, %c0_66] : memref<9x8x512xf32, #tpu.memory_space<vmem>>, vector<1x8x512xf32>
    %116 = vector.shape_cast %115 : vector<1x8x512xf32> to vector<8x512xf32>
    %c0_67 = arith.constant 0 : index
    %c0_68 = arith.constant 0 : index
    %117 = vector.load %arg8[%c0_67, %c0_68] : memref<8x128xbf16, #tpu.memory_space<vmem>>, vector<8x128xbf16>
    %cst_69 = arith.constant dense<0.000000e+00> : vector<8x512xf32>
    %118 = tpu.matmul %117, %6, %cst_69 {dimension_numbers = #tpu.dot_dimension_numbers<[1], [0], [0], [1], [0, 0, 1, 1], [], []>} : vector<8x128xbf16>, vector<128x512xbf16>, vector<8x512xf32> -> vector<8x512xf32>
    %119 = arith.addf %116, %118 : vector<8x512xf32>
    %120 = vector.extract_strided_slice %119 {offsets = [0, 0], sizes = [8, 384], strides = [1, 1]} : vector<8x512xf32> to vector<8x384xf32>
    %121 = arith.negf %120 : vector<8x384xf32>
    %122 = math.exp %121 : vector<8x384xf32>
    %cst_70 = arith.constant 1.000000e+00 : f32
    %123 = vector.broadcast %cst_70 : f32 to vector<8x384xf32>
    %124 = arith.addf %123, %122 : vector<8x384xf32>
    %125 = arith.divf %123, %124 : vector<8x384xf32>
    %126 = vector.extract_strided_slice %125 {offsets = [0, 0], sizes = [8, 128], strides = [1, 1]} : vector<8x384xf32> to vector<8x128xf32>
    %127 = vector.extract_strided_slice %125 {offsets = [0, 128], sizes = [8, 128], strides = [1, 1]} : vector<8x384xf32> to vector<8x128xf32>
    %128 = vector.extract_strided_slice %125 {offsets = [0, 256], sizes = [8, 128], strides = [1, 1]} : vector<8x384xf32> to vector<8x128xf32>
    %129 = vector.extract_strided_slice %119 {offsets = [0, 384], sizes = [8, 128], strides = [1, 1]} : vector<8x512xf32> to vector<8x128xf32>
    %130 = math.tanh %129 : vector<8x128xf32>
    %c0_71 = arith.constant 0 : index
    %c0_72 = arith.constant 0 : index
    %131 = vector.load %arg9[%c0_71, %c0_72] : memref<8x128xf32, #tpu.memory_space<vmem>>, vector<8x128xf32>
    %132 = arith.mulf %127, %131 : vector<8x128xf32>
    %133 = arith.mulf %126, %130 : vector<8x128xf32>
    %134 = arith.addf %132, %133 : vector<8x128xf32>
    %135 = math.tanh %134 : vector<8x128xf32>
    %136 = arith.mulf %128, %135 : vector<8x128xf32>
    %137 = arith.truncf %136 : vector<8x128xf32> to vector<8x128xbf16>
    %c0_73 = arith.constant 0 : index
    %c0_74 = arith.constant 0 : index
    %138 = vector.load %arg9[%c0_73, %c0_74] : memref<8x128xf32, #tpu.memory_space<vmem>>, vector<8x128xf32>
    tpu.vector_store %arg9[%c0_73, %c0_74], %134 {strides = array<i32>} : memref<8x128xf32, #tpu.memory_space<vmem>>, vector<8x128xf32>,
    %c0_75 = arith.constant 0 : index
    %c0_76 = arith.constant 0 : index
    %139 = vector.load %arg8[%c0_75, %c0_76] : memref<8x128xbf16, #tpu.memory_space<vmem>>, vector<8x128xbf16>
    tpu.vector_store %arg8[%c0_75, %c0_76], %137 {strides = array<i32>} : memref<8x128xbf16, #tpu.memory_space<vmem>>, vector<8x128xbf16>,
    %140 = arith.index_cast %c3_i32 : i32 to index
    %c0_77 = arith.constant 0 : index
    %c0_78 = arith.constant 0 : index
    %141 = vector.load %arg6[%140, %c0_77, %c0_78] : memref<9x8x128xbf16, #tpu.memory_space<vmem>>, vector<1x8x128xbf16>
    %142 = vector.shape_cast %141 : vector<1x8x128xbf16> to vector<8x128xbf16>
    %143 = vector.shape_cast %137 : vector<8x128xbf16> to vector<1x8x128xbf16>
    tpu.vector_store %arg6[%140, %c0_77, %c0_78], %143 {strides = array<i32>} : memref<9x8x128xbf16, #tpu.memory_space<vmem>>, vector<1x8x128xbf16>,
    %c4_i32 = arith.constant 4 : i32
    %144 = arith.index_cast %c4_i32 : i32 to index
    %c0_79 = arith.constant 0 : index
    %c0_80 = arith.constant 0 : index
    %145 = vector.load %arg7[%144, %c0_79, %c0_80] : memref<9x8x512xf32, #tpu.memory_space<vmem>>, vector<1x8x512xf32>
    %146 = vector.shape_cast %145 : vector<1x8x512xf32> to vector<8x512xf32>
    %c0_81 = arith.constant 0 : index
    %c0_82 = arith.constant 0 : index
    %147 = vector.load %arg8[%c0_81, %c0_82] : memref<8x128xbf16, #tpu.memory_space<vmem>>, vector<8x128xbf16>
    %cst_83 = arith.constant dense<0.000000e+00> : vector<8x512xf32>
    %148 = tpu.matmul %147, %6, %cst_83 {dimension_numbers = #tpu.dot_dimension_numbers<[1], [0], [0], [1], [0, 0, 1, 1], [], []>} : vector<8x128xbf16>, vector<128x512xbf16>, vector<8x512xf32> -> vector<8x512xf32>
    %149 = arith.addf %146, %148 : vector<8x512xf32>
    %150 = vector.extract_strided_slice %149 {offsets = [0, 0], sizes = [8, 384], strides = [1, 1]} : vector<8x512xf32> to vector<8x384xf32>
    %151 = arith.negf %150 : vector<8x384xf32>
    %152 = math.exp %151 : vector<8x384xf32>
    %cst_84 = arith.constant 1.000000e+00 : f32
    %153 = vector.broadcast %cst_84 : f32 to vector<8x384xf32>
    %154 = arith.addf %153, %152 : vector<8x384xf32>
    %155 = arith.divf %153, %154 : vector<8x384xf32>
    %156 = vector.extract_strided_slice %155 {offsets = [0, 0], sizes = [8, 128], strides = [1, 1]} : vector<8x384xf32> to vector<8x128xf32>
    %157 = vector.extract_strided_slice %155 {offsets = [0, 128], sizes = [8, 128], strides = [1, 1]} : vector<8x384xf32> to vector<8x128xf32>
    %158 = vector.extract_strided_slice %155 {offsets = [0, 256], sizes = [8, 128], strides = [1, 1]} : vector<8x384xf32> to vector<8x128xf32>
    %159 = vector.extract_strided_slice %149 {offsets = [0, 384], sizes = [8, 128], strides = [1, 1]} : vector<8x512xf32> to vector<8x128xf32>
    %160 = math.tanh %159 : vector<8x128xf32>
    %c0_85 = arith.constant 0 : index
    %c0_86 = arith.constant 0 : index
    %161 = vector.load %arg9[%c0_85, %c0_86] : memref<8x128xf32, #tpu.memory_space<vmem>>, vector<8x128xf32>
    %162 = arith.mulf %157, %161 : vector<8x128xf32>
    %163 = arith.mulf %156, %160 : vector<8x128xf32>
    %164 = arith.addf %162, %163 : vector<8x128xf32>
    %165 = math.tanh %164 : vector<8x128xf32>
    %166 = arith.mulf %158, %165 : vector<8x128xf32>
    %167 = arith.truncf %166 : vector<8x128xf32> to vector<8x128xbf16>
    %c0_87 = arith.constant 0 : index
    %c0_88 = arith.constant 0 : index
    %168 = vector.load %arg9[%c0_87, %c0_88] : memref<8x128xf32, #tpu.memory_space<vmem>>, vector<8x128xf32>
    tpu.vector_store %arg9[%c0_87, %c0_88], %164 {strides = array<i32>} : memref<8x128xf32, #tpu.memory_space<vmem>>, vector<8x128xf32>,
    %c0_89 = arith.constant 0 : index
    %c0_90 = arith.constant 0 : index
    %169 = vector.load %arg8[%c0_89, %c0_90] : memref<8x128xbf16, #tpu.memory_space<vmem>>, vector<8x128xbf16>
    tpu.vector_store %arg8[%c0_89, %c0_90], %167 {strides = array<i32>} : memref<8x128xbf16, #tpu.memory_space<vmem>>, vector<8x128xbf16>,
    %170 = arith.index_cast %c4_i32 : i32 to index
    %c0_91 = arith.constant 0 : index
    %c0_92 = arith.constant 0 : index
    %171 = vector.load %arg6[%170, %c0_91, %c0_92] : memref<9x8x128xbf16, #tpu.memory_space<vmem>>, vector<1x8x128xbf16>
    %172 = vector.shape_cast %171 : vector<1x8x128xbf16> to vector<8x128xbf16>
    %173 = vector.shape_cast %167 : vector<8x128xbf16> to vector<1x8x128xbf16>
    tpu.vector_store %arg6[%170, %c0_91, %c0_92], %173 {strides = array<i32>} : memref<9x8x128xbf16, #tpu.memory_space<vmem>>, vector<1x8x128xbf16>,
    %c5_i32 = arith.constant 5 : i32
    %174 = arith.index_cast %c5_i32 : i32 to index
    %c0_93 = arith.constant 0 : index
    %c0_94 = arith.constant 0 : index
    %175 = vector.load %arg7[%174, %c0_93, %c0_94] : memref<9x8x512xf32, #tpu.memory_space<vmem>>, vector<1x8x512xf32>
    %176 = vector.shape_cast %175 : vector<1x8x512xf32> to vector<8x512xf32>
    %c0_95 = arith.constant 0 : index
    %c0_96 = arith.constant 0 : index
    %177 = vector.load %arg8[%c0_95, %c0_96] : memref<8x128xbf16, #tpu.memory_space<vmem>>, vector<8x128xbf16>
    %cst_97 = arith.constant dense<0.000000e+00> : vector<8x512xf32>
    %178 = tpu.matmul %177, %6, %cst_97 {dimension_numbers = #tpu.dot_dimension_numbers<[1], [0], [0], [1], [0, 0, 1, 1], [], []>} : vector<8x128xbf16>, vector<128x512xbf16>, vector<8x512xf32> -> vector<8x512xf32>
    %179 = arith.addf %176, %178 : vector<8x512xf32>
    %180 = vector.extract_strided_slice %179 {offsets = [0, 0], sizes = [8, 384], strides = [1, 1]} : vector<8x512xf32> to vector<8x384xf32>
    %181 = arith.negf %180 : vector<8x384xf32>
    %182 = math.exp %181 : vector<8x384xf32>
    %cst_98 = arith.constant 1.000000e+00 : f32
    %183 = vector.broadcast %cst_98 : f32 to vector<8x384xf32>
    %184 = arith.addf %183, %182 : vector<8x384xf32>
    %185 = arith.divf %183, %184 : vector<8x384xf32>
    %186 = vector.extract_strided_slice %185 {offsets = [0, 0], sizes = [8, 128], strides = [1, 1]} : vector<8x384xf32> to vector<8x128xf32>
    %187 = vector.extract_strided_slice %185 {offsets = [0, 128], sizes = [8, 128], strides = [1, 1]} : vector<8x384xf32> to vector<8x128xf32>
    %188 = vector.extract_strided_slice %185 {offsets = [0, 256], sizes = [8, 128], strides = [1, 1]} : vector<8x384xf32> to vector<8x128xf32>
    %189 = vector.extract_strided_slice %179 {offsets = [0, 384], sizes = [8, 128], strides = [1, 1]} : vector<8x512xf32> to vector<8x128xf32>
    %190 = math.tanh %189 : vector<8x128xf32>
    %c0_99 = arith.constant 0 : index
    %c0_100 = arith.constant 0 : index
    %191 = vector.load %arg9[%c0_99, %c0_100] : memref<8x128xf32, #tpu.memory_space<vmem>>, vector<8x128xf32>
    %192 = arith.mulf %187, %191 : vector<8x128xf32>
    %193 = arith.mulf %186, %190 : vector<8x128xf32>
    %194 = arith.addf %192, %193 : vector<8x128xf32>
    %195 = math.tanh %194 : vector<8x128xf32>
    %196 = arith.mulf %188, %195 : vector<8x128xf32>
    %197 = arith.truncf %196 : vector<8x128xf32> to vector<8x128xbf16>
    %c0_101 = arith.constant 0 : index
    %c0_102 = arith.constant 0 : index
    %198 = vector.load %arg9[%c0_101, %c0_102] : memref<8x128xf32, #tpu.memory_space<vmem>>, vector<8x128xf32>
    tpu.vector_store %arg9[%c0_101, %c0_102], %194 {strides = array<i32>} : memref<8x128xf32, #tpu.memory_space<vmem>>, vector<8x128xf32>,
    %c0_103 = arith.constant 0 : index
    %c0_104 = arith.constant 0 : index
    %199 = vector.load %arg8[%c0_103, %c0_104] : memref<8x128xbf16, #tpu.memory_space<vmem>>, vector<8x128xbf16>
    tpu.vector_store %arg8[%c0_103, %c0_104], %197 {strides = array<i32>} : memref<8x128xbf16, #tpu.memory_space<vmem>>, vector<8x128xbf16>,
    %200 = arith.index_cast %c5_i32 : i32 to index
    %c0_105 = arith.constant 0 : index
    %c0_106 = arith.constant 0 : index
    %201 = vector.load %arg6[%200, %c0_105, %c0_106] : memref<9x8x128xbf16, #tpu.memory_space<vmem>>, vector<1x8x128xbf16>
    %202 = vector.shape_cast %201 : vector<1x8x128xbf16> to vector<8x128xbf16>
    %203 = vector.shape_cast %197 : vector<8x128xbf16> to vector<1x8x128xbf16>
    tpu.vector_store %arg6[%200, %c0_105, %c0_106], %203 {strides = array<i32>} : memref<9x8x128xbf16, #tpu.memory_space<vmem>>, vector<1x8x128xbf16>,
    %c6_i32 = arith.constant 6 : i32
    %204 = arith.index_cast %c6_i32 : i32 to index
    %c0_107 = arith.constant 0 : index
    %c0_108 = arith.constant 0 : index
    %205 = vector.load %arg7[%204, %c0_107, %c0_108] : memref<9x8x512xf32, #tpu.memory_space<vmem>>, vector<1x8x512xf32>
    %206 = vector.shape_cast %205 : vector<1x8x512xf32> to vector<8x512xf32>
    %c0_109 = arith.constant 0 : index
    %c0_110 = arith.constant 0 : index
    %207 = vector.load %arg8[%c0_109, %c0_110] : memref<8x128xbf16, #tpu.memory_space<vmem>>, vector<8x128xbf16>
    %cst_111 = arith.constant dense<0.000000e+00> : vector<8x512xf32>
    %208 = tpu.matmul %207, %6, %cst_111 {dimension_numbers = #tpu.dot_dimension_numbers<[1], [0], [0], [1], [0, 0, 1, 1], [], []>} : vector<8x128xbf16>, vector<128x512xbf16>, vector<8x512xf32> -> vector<8x512xf32>
    %209 = arith.addf %206, %208 : vector<8x512xf32>
    %210 = vector.extract_strided_slice %209 {offsets = [0, 0], sizes = [8, 384], strides = [1, 1]} : vector<8x512xf32> to vector<8x384xf32>
    %211 = arith.negf %210 : vector<8x384xf32>
    %212 = math.exp %211 : vector<8x384xf32>
    %cst_112 = arith.constant 1.000000e+00 : f32
    %213 = vector.broadcast %cst_112 : f32 to vector<8x384xf32>
    %214 = arith.addf %213, %212 : vector<8x384xf32>
    %215 = arith.divf %213, %214 : vector<8x384xf32>
    %216 = vector.extract_strided_slice %215 {offsets = [0, 0], sizes = [8, 128], strides = [1, 1]} : vector<8x384xf32> to vector<8x128xf32>
    %217 = vector.extract_strided_slice %215 {offsets = [0, 128], sizes = [8, 128], strides = [1, 1]} : vector<8x384xf32> to vector<8x128xf32>
    %218 = vector.extract_strided_slice %215 {offsets = [0, 256], sizes = [8, 128], strides = [1, 1]} : vector<8x384xf32> to vector<8x128xf32>
    %219 = vector.extract_strided_slice %209 {offsets = [0, 384], sizes = [8, 128], strides = [1, 1]} : vector<8x512xf32> to vector<8x128xf32>
    %220 = math.tanh %219 : vector<8x128xf32>
    %c0_113 = arith.constant 0 : index
    %c0_114 = arith.constant 0 : index
    %221 = vector.load %arg9[%c0_113, %c0_114] : memref<8x128xf32, #tpu.memory_space<vmem>>, vector<8x128xf32>
    %222 = arith.mulf %217, %221 : vector<8x128xf32>
    %223 = arith.mulf %216, %220 : vector<8x128xf32>
    %224 = arith.addf %222, %223 : vector<8x128xf32>
    %225 = math.tanh %224 : vector<8x128xf32>
    %226 = arith.mulf %218, %225 : vector<8x128xf32>
    %227 = arith.truncf %226 : vector<8x128xf32> to vector<8x128xbf16>
    %c0_115 = arith.constant 0 : index
    %c0_116 = arith.constant 0 : index
    %228 = vector.load %arg9[%c0_115, %c0_116] : memref<8x128xf32, #tpu.memory_space<vmem>>, vector<8x128xf32>
    tpu.vector_store %arg9[%c0_115, %c0_116], %224 {strides = array<i32>} : memref<8x128xf32, #tpu.memory_space<vmem>>, vector<8x128xf32>,
    %c0_117 = arith.constant 0 : index
    %c0_118 = arith.constant 0 : index
    %229 = vector.load %arg8[%c0_117, %c0_118] : memref<8x128xbf16, #tpu.memory_space<vmem>>, vector<8x128xbf16>
    tpu.vector_store %arg8[%c0_117, %c0_118], %227 {strides = array<i32>} : memref<8x128xbf16, #tpu.memory_space<vmem>>, vector<8x128xbf16>,
    %230 = arith.index_cast %c6_i32 : i32 to index
    %c0_119 = arith.constant 0 : index
    %c0_120 = arith.constant 0 : index
    %231 = vector.load %arg6[%230, %c0_119, %c0_120] : memref<9x8x128xbf16, #tpu.memory_space<vmem>>, vector<1x8x128xbf16>
    %232 = vector.shape_cast %231 : vector<1x8x128xbf16> to vector<8x128xbf16>
    %233 = vector.shape_cast %227 : vector<8x128xbf16> to vector<1x8x128xbf16>
    tpu.vector_store %arg6[%230, %c0_119, %c0_120], %233 {strides = array<i32>} : memref<9x8x128xbf16, #tpu.memory_space<vmem>>, vector<1x8x128xbf16>,
    %c7_i32 = arith.constant 7 : i32
    %234 = arith.index_cast %c7_i32 : i32 to index
    %c0_121 = arith.constant 0 : index
    %c0_122 = arith.constant 0 : index
    %235 = vector.load %arg7[%234, %c0_121, %c0_122] : memref<9x8x512xf32, #tpu.memory_space<vmem>>, vector<1x8x512xf32>
    %236 = vector.shape_cast %235 : vector<1x8x512xf32> to vector<8x512xf32>
    %c0_123 = arith.constant 0 : index
    %c0_124 = arith.constant 0 : index
    %237 = vector.load %arg8[%c0_123, %c0_124] : memref<8x128xbf16, #tpu.memory_space<vmem>>, vector<8x128xbf16>
    %cst_125 = arith.constant dense<0.000000e+00> : vector<8x512xf32>
    %238 = tpu.matmul %237, %6, %cst_125 {dimension_numbers = #tpu.dot_dimension_numbers<[1], [0], [0], [1], [0, 0, 1, 1], [], []>} : vector<8x128xbf16>, vector<128x512xbf16>, vector<8x512xf32> -> vector<8x512xf32>
    %239 = arith.addf %236, %238 : vector<8x512xf32>
    %240 = vector.extract_strided_slice %239 {offsets = [0, 0], sizes = [8, 384], strides = [1, 1]} : vector<8x512xf32> to vector<8x384xf32>
    %241 = arith.negf %240 : vector<8x384xf32>
    %242 = math.exp %241 : vector<8x384xf32>
    %cst_126 = arith.constant 1.000000e+00 : f32
    %243 = vector.broadcast %cst_126 : f32 to vector<8x384xf32>
    %244 = arith.addf %243, %242 : vector<8x384xf32>
    %245 = arith.divf %243, %244 : vector<8x384xf32>
    %246 = vector.extract_strided_slice %245 {offsets = [0, 0], sizes = [8, 128], strides = [1, 1]} : vector<8x384xf32> to vector<8x128xf32>
    %247 = vector.extract_strided_slice %245 {offsets = [0, 128], sizes = [8, 128], strides = [1, 1]} : vector<8x384xf32> to vector<8x128xf32>
    %248 = vector.extract_strided_slice %245 {offsets = [0, 256], sizes = [8, 128], strides = [1, 1]} : vector<8x384xf32> to vector<8x128xf32>
    %249 = vector.extract_strided_slice %239 {offsets = [0, 384], sizes = [8, 128], strides = [1, 1]} : vector<8x512xf32> to vector<8x128xf32>
    %250 = math.tanh %249 : vector<8x128xf32>
    %c0_127 = arith.constant 0 : index
    %c0_128 = arith.constant 0 : index
    %251 = vector.load %arg9[%c0_127, %c0_128] : memref<8x128xf32, #tpu.memory_space<vmem>>, vector<8x128xf32>
    %252 = arith.mulf %247, %251 : vector<8x128xf32>
    %253 = arith.mulf %246, %250 : vector<8x128xf32>
    %254 = arith.addf %252, %253 : vector<8x128xf32>
    %255 = math.tanh %254 : vector<8x128xf32>
    %256 = arith.mulf %248, %255 : vector<8x128xf32>
    %257 = arith.truncf %256 : vector<8x128xf32> to vector<8x128xbf16>
    %c0_129 = arith.constant 0 : index
    %c0_130 = arith.constant 0 : index
    %258 = vector.load %arg9[%c0_129, %c0_130] : memref<8x128xf32, #tpu.memory_space<vmem>>, vector<8x128xf32>
    tpu.vector_store %arg9[%c0_129, %c0_130], %254 {strides = array<i32>} : memref<8x128xf32, #tpu.memory_space<vmem>>, vector<8x128xf32>,
    %c0_131 = arith.constant 0 : index
    %c0_132 = arith.constant 0 : index
    %259 = vector.load %arg8[%c0_131, %c0_132] : memref<8x128xbf16, #tpu.memory_space<vmem>>, vector<8x128xbf16>
    tpu.vector_store %arg8[%c0_131, %c0_132], %257 {strides = array<i32>} : memref<8x128xbf16, #tpu.memory_space<vmem>>, vector<8x128xbf16>,
    %260 = arith.index_cast %c7_i32 : i32 to index
    %c0_133 = arith.constant 0 : index
    %c0_134 = arith.constant 0 : index
    %261 = vector.load %arg6[%260, %c0_133, %c0_134] : memref<9x8x128xbf16, #tpu.memory_space<vmem>>, vector<1x8x128xbf16>
    %262 = vector.shape_cast %261 : vector<1x8x128xbf16> to vector<8x128xbf16>
    %263 = vector.shape_cast %257 : vector<8x128xbf16> to vector<1x8x128xbf16>
    tpu.vector_store %arg6[%260, %c0_133, %c0_134], %263 {strides = array<i32>} : memref<9x8x128xbf16, #tpu.memory_space<vmem>>, vector<1x8x128xbf16>,
    %c8_i32 = arith.constant 8 : i32
    %264 = arith.index_cast %c8_i32 : i32 to index
    %c0_135 = arith.constant 0 : index
    %c0_136 = arith.constant 0 : index
    %265 = vector.load %arg7[%264, %c0_135, %c0_136] : memref<9x8x512xf32, #tpu.memory_space<vmem>>, vector<1x8x512xf32>
    %266 = vector.shape_cast %265 : vector<1x8x512xf32> to vector<8x512xf32>
    %c0_137 = arith.constant 0 : index
    %c0_138 = arith.constant 0 : index
    %267 = vector.load %arg8[%c0_137, %c0_138] : memref<8x128xbf16, #tpu.memory_space<vmem>>, vector<8x128xbf16>
    %cst_139 = arith.constant dense<0.000000e+00> : vector<8x512xf32>
    %268 = tpu.matmul %267, %6, %cst_139 {dimension_numbers = #tpu.dot_dimension_numbers<[1], [0], [0], [1], [0, 0, 1, 1], [], []>} : vector<8x128xbf16>, vector<128x512xbf16>, vector<8x512xf32> -> vector<8x512xf32>
    %269 = arith.addf %266, %268 : vector<8x512xf32>
    %270 = vector.extract_strided_slice %269 {offsets = [0, 0], sizes = [8, 384], strides = [1, 1]} : vector<8x512xf32> to vector<8x384xf32>
    %271 = arith.negf %270 : vector<8x384xf32>
    %272 = math.exp %271 : vector<8x384xf32>
    %cst_140 = arith.constant 1.000000e+00 : f32
    %273 = vector.broadcast %cst_140 : f32 to vector<8x384xf32>
    %274 = arith.addf %273, %272 : vector<8x384xf32>
    %275 = arith.divf %273, %274 : vector<8x384xf32>
    %276 = vector.extract_strided_slice %275 {offsets = [0, 0], sizes = [8, 128], strides = [1, 1]} : vector<8x384xf32> to vector<8x128xf32>
    %277 = vector.extract_strided_slice %275 {offsets = [0, 128], sizes = [8, 128], strides = [1, 1]} : vector<8x384xf32> to vector<8x128xf32>
    %278 = vector.extract_strided_slice %275 {offsets = [0, 256], sizes = [8, 128], strides = [1, 1]} : vector<8x384xf32> to vector<8x128xf32>
    %279 = vector.extract_strided_slice %269 {offsets = [0, 384], sizes = [8, 128], strides = [1, 1]} : vector<8x512xf32> to vector<8x128xf32>
    %280 = math.tanh %279 : vector<8x128xf32>
    %c0_141 = arith.constant 0 : index
    %c0_142 = arith.constant 0 : index
    %281 = vector.load %arg9[%c0_141, %c0_142] : memref<8x128xf32, #tpu.memory_space<vmem>>, vector<8x128xf32>
    %282 = arith.mulf %277, %281 : vector<8x128xf32>
    %283 = arith.mulf %276, %280 : vector<8x128xf32>
    %284 = arith.addf %282, %283 : vector<8x128xf32>
    %285 = math.tanh %284 : vector<8x128xf32>
    %286 = arith.mulf %278, %285 : vector<8x128xf32>
    %287 = arith.truncf %286 : vector<8x128xf32> to vector<8x128xbf16>
    %c0_143 = arith.constant 0 : index
    %c0_144 = arith.constant 0 : index
    %288 = vector.load %arg9[%c0_143, %c0_144] : memref<8x128xf32, #tpu.memory_space<vmem>>, vector<8x128xf32>
    tpu.vector_store %arg9[%c0_143, %c0_144], %284 {strides = array<i32>} : memref<8x128xf32, #tpu.memory_space<vmem>>, vector<8x128xf32>,
    %c0_145 = arith.constant 0 : index
    %c0_146 = arith.constant 0 : index
    %289 = vector.load %arg8[%c0_145, %c0_146] : memref<8x128xbf16, #tpu.memory_space<vmem>>, vector<8x128xbf16>
    tpu.vector_store %arg8[%c0_145, %c0_146], %287 {strides = array<i32>} : memref<8x128xbf16, #tpu.memory_space<vmem>>, vector<8x128xbf16>,
    %290 = arith.index_cast %c8_i32 : i32 to index
    %c0_147 = arith.constant 0 : index
    %c0_148 = arith.constant 0 : index
    %291 = vector.load %arg6[%290, %c0_147, %c0_148] : memref<9x8x128xbf16, #tpu.memory_space<vmem>>, vector<1x8x128xbf16>
    %292 = vector.shape_cast %291 : vector<1x8x128xbf16> to vector<8x128xbf16>
    %293 = vector.shape_cast %287 : vector<8x128xbf16> to vector<1x8x128xbf16>
    tpu.vector_store %arg6[%290, %c0_147, %c0_148], %293 {strides = array<i32>} : memref<9x8x128xbf16, #tpu.memory_space<vmem>>, vector<1x8x128xbf16>,
    %c9_i32_149 = arith.constant 9 : i32
    return
  }
  func.func @transform_1(%arg0: i32, %arg1: i32) -> (i32, i32, i32) {
    %c0_i32 = arith.constant 0 : i32
    %c0_i32_0 = arith.constant 0 : i32
    %c0_i32_1 = arith.constant 0 : i32
    return %arg1, %c0_i32, %c0_i32_0 : i32, i32, i32
  }
  func.func @transform_2(%arg0: i32, %arg1: i32) -> (i32, i32, i32) {
    %c0_i32 = arith.constant 0 : i32
    %c0_i32_0 = arith.constant 0 : i32
    %c0_i32_1 = arith.constant 0 : i32
    return %arg1, %c0_i32, %c0_i32_0 : i32, i32, i32
  }
  func.func @transform_3(%arg0: i32, %arg1: i32) -> (i32, i32, i32) {
    %c0_i32 = arith.constant 0 : i32
    %c0_i32_0 = arith.constant 0 : i32
    %c0_i32_1 = arith.constant 0 : i32
    return %arg1, %c0_i32, %c0_i32_0 : i32, i32, i32
  }
  func.func @transform_4(%arg0: i32, %arg1: i32) -> (i32, i32, i32) {
    %c0_i32 = arith.constant 0 : i32
    %c0_i32_0 = arith.constant 0 : i32
    %c0_i32_1 = arith.constant 0 : i32
    return %c0_i32, %arg0, %c0_i32_0 : i32, i32, i32
  }
}

</mosaic_0001>

<bundles_post_ra>
// kernel: tpu_custom_call.1
= control target key start
LH: loop header
LB: loop body
LE: loop exit
PB: predicated region body
PF: predicated region fallthrough
CT: control target
= control target key end

     0   :  { %9 = vsyncpa [#allocation7], 0  ;;  %s3789_s0 = inlined_call_operand.hbm [shape: bf16[1,9,8,128], index: 0, kind: input, shape index: {}]   ;;  %s3790_s1 = inlined_call_operand.hbm [shape: bf16[2,128,512], index: 1, kind: input, shape index: {}]   ;;  %s3791_s2 = inlined_call_operand.hbm [shape: bf16[2,128,512], index: 2, kind: input, shape index: {}]   ;;  %s3792_s3 = inlined_call_operand.vmem [shape: f32[2,1,512], index: 3, kind: input, shape index: {}]   ;;  %s3793_s4 = inlined_call_operand.hbm [shape: bf16[9,8,128], index: 4, kind: output, shape index: {}]  }
   0x1   :  { %11 = vsyncpa [#allocation7 + $0x1], 0 }
   0x2   :  { %12 = vsyncpa [#allocation10], 0 }
   0x3   :  { %14 = vsyncpa [#allocation10 + $0x1], 0 }
   0x4   :  { %15 = vsyncpa [#allocation8], 0  ;;  %s2821_s15 = smov 0   ;;  %s2823_s16 = smov 0  }
   0x5   :  { %s2825_s17 = smov 0   ;;  %s2827_s18 = smov 0  }
   0x6   :  { %s2829_s19 = smov 0   ;;  %s2831_s20 = smov 0  }
   0x7 LB: > { %s2130_s21 = sadd.s32 4294967295, %s2786_s20   ;;  %s30_s22 = sadd.s32 1, %s2782_s19  ;;  %s2786_s20 = sphi %s2831_s20, %s21_s20   ;;  %s2782_s19 = sphi %s2829_s19, %s3853_s19   ;;  %s2778_s18 = sphi %s2827_s18, %s3852_s18   ;;  %s2774_s17 = sphi %s2825_s17, %s3851_s17   ;;  %s2770_s16 = sphi %s2823_s16, %s3850_s16   ;;  %s2766_s15 = sphi %s2821_s15, %s3849_s15  }
   0x8   : > { %p31_p0 = scmp.ge.s32.totalorder %s30_s22, 2  ;;  %s40_s23 = sadd.s32 1, %s2774_s17 }
   0x9   : > { %p47_p1 = scmp.ne.s32.totalorder %s2774_s17, %s2770_s16  ;;  %p48_p2 = scmp.eq.s32.totalorder %s2786_s20, 0 }
   0xa   : > { %s3855_s22 = smov (%p31_p0, %s30_s22), 0  ;;  %p53_p4 = scmp.ne.s32.totalorder %s2770_s16, %s2766_s15 }
   0xb   : > { %p2857_p3 = por %p48_p2, %p47_p1  ;;  %s37_s25 = ssub.s32 %s2782_s19, %s3855_s22 }
   0xc   : > { %p54_p5 = scmp.eq.s32.totalorder %s2130_s21, 0  ;;  %p38_p6 = scmp.eq.s32.totalorder %s37_s25, 0 }
   0xd   : > { %p2277_p8 = scmp.lt.s32.totalorder %s2786_s20, 2  ;;  %s2875_s28 = sand.u32 1, %s2774_s17  }
   0xe   : > { %p2866_p7 = por %p54_p5, %p53_p4  ;;  %s2245_s29 = sshll.u32 %s2782_s19, 12 }
   0xf   : > { %s2872_s27 = scalar_select %p38_p6, %s2774_s17, %s40_s23  }
  0x10   : > { %s3798_s26 = scalar_select %p2866_p7, 1, 0 }
  0x11   : > { %s2133_s30 = sshll.u32 %s2875_s28, 8  ;;  %s2884_s7 = scalar_lea.hbm %s3790_s1, %s2245_s29 }
  0x12   : > { %s159_s8 = scalar_lea.vmem [#allocation6], %s2133_s30  ;;  %p2890_p9 = pnand %p2277_p8, %p2857_p3 }
  0x13   : > { %s166_s9 = sshll.u32 %s159_s8, 4  ;;  %s156_s11 = scalar_lea.sflag [#allocation7], %s2875_s28  ;;  %s2894_s9 = int_to_ptr.vmem [resolvable:$true] %s166_s9 }
  0x14   : > { %s2612_s12 = scalar_lea.hbm %s2884_s7, 4096  ;;  %p2614_p11 = pneg %p2890_p9 }
  0x15   : > { %p2613_p10 = scmp.ne.s32.totalorder %s2884_s7, %s2612_s12  ;;  %s2617_s15 = scalar_lea.hbm %s3790_s1, 8192 }
  0x16   : > { %p2618_p0 = scmp.lt.u32.totalorder %s2884_s7, %s3790_s1  ;;  %p2619_p1 = scmp.lt.u32.totalorder %s2617_s15, %s2612_s12 }
  0x17   : > { %p2615_p12 = pnand %p2614_p11, %p2613_p10  ;;  %p2621_p3 = scmp.lt.u32.totalorder %s2612_s12, %s2884_s7 }
  0x18   : > { %p2620_p2 = por %p2619_p1, %p2618_p0 }
  0x19   : > { %p2616_p13 = pneg %p2615_p12 }
  0x1a   : > { %p2622_p4 = por %p2621_p3, %p2620_p2 }
  0x1c   : > { %p2623_p5 = pnand %p2622_p4, %p2616_p13 }
  0x1e   : > { %2626 = shalt.err (!%p2623_p5)
}
  0x1f   : > { %s2627_s25 = scalar_lea.vmem %s2894_s9, 4096  ;;  %s2788_s5 = smov [#allocation6]  }
  0x20   : > { %p2628_p6 = scmp.ne.s32.totalorder %s2894_s9, %s2627_s25  ;;  %s2632_s6 = sshll.u32 %s2788_s5, 4  ;;  %s2633_s6 = int_to_ptr.vmem [resolvable:$false] %s2632_s6 }
  0x21   : > { %s2634_s8 = scalar_lea.vmem %s2633_s6, 8192  ;;  %p2635_p12 = scmp.lt.s32.totalorder %s2894_s9, %s2633_s6 }
  0x22   : > { %p2630_p8 = pnand %p2628_p6, %p2614_p11  ;;  %p2636_p0 = scmp.lt.s32.totalorder %s2634_s8, %s2627_s25 }
  0x24   : > { %p2631_p10 = pneg %p2630_p8  ;;  %p2637_p1 = por %p2636_p0, %p2635_p12 }
  0x26   : > { %p2638_p2 = pnand %p2637_p1, %p2631_p10 }
  0x28   : > { %2641 = shalt.err (!%p2638_p2)
}
  0x29   : > { %s2789_s12 = smov 256   ;;  %s2790_s13 = smov 16  }
  0x2a   : > { %2273 = dma.hbm_to_vmem [thread:$0]  (!%p2890_p9), %s2884_s7, 4096, %s2894_s9, %s156_s11, %s2789_s12, %s2789_s12, %s2790_s13  }
  0x2b   : > { %p2139_p13 = scmp.ge.s32.totalorder %s2786_s20, 1  ;;  %p202_p3 = scmp.lt.s32.totalorder %s2786_s20, 3 }
  0x2c   : > { %s2938_s24 = scalar_lea.hbm %s3791_s2, %s2245_s29  ;;  %s180_s25 = scalar_lea.vmem [#allocation9], %s2133_s30 }
  0x2d   : > { %p2929_p4 = pnand %p2139_p13, %p202_p3  ;;  %s187_s5 = sshll.u32 %s180_s25, 4  ;;  %s2942_s5 = int_to_ptr.vmem [resolvable:$true] %s187_s5 }
  0x2e   : > { %s177_s7 = scalar_lea.sflag [#allocation10], %s2875_s28  ;;  %s2642_s9 = scalar_lea.hbm %s2938_s24, 4096 }
  0x2f   : > { %p2643_p5 = scmp.ne.s32.totalorder %s2938_s24, %s2642_s9  ;;  %s2647_s29 = scalar_lea.hbm %s3791_s2, 8192 }
  0x30   : > { %p2648_p10 = scmp.lt.u32.totalorder %s2938_s24, %s3791_s2  ;;  %p2649_p12 = scmp.lt.u32.totalorder %s2647_s29, %s2642_s9 }
  0x31   : > { %p2645_p6 = pnand %p2643_p5, %p2614_p11  ;;  %p2651_p1 = scmp.lt.u32.totalorder %s2642_s9, %s2938_s24 }
  0x32   : > { %p2650_p0 = por %p2649_p12, %p2648_p10 }
  0x33   : > { %p2646_p8 = pneg %p2645_p6 }
  0x34   : > { %p2652_p2 = por %p2651_p1, %p2650_p0 }
  0x36   : > { %p2653_p13 = pnand %p2652_p2, %p2646_p8 }
  0x38   : > { %2656 = shalt.err (!%p2653_p13)
}
  0x39   : > { %s2657_s30 = scalar_lea.vmem %s2942_s5, 4096  ;;  %s2791_s23 = smov [#allocation9]  }
  0x3a   : > { %p2658_p3 = scmp.ne.s32.totalorder %s2942_s5, %s2657_s30  ;;  %s2662_s25 = sshll.u32 %s2791_s23, 4  ;;  %s2663_s25 = int_to_ptr.vmem [resolvable:$false] %s2662_s25 }
  0x3b   : > { %s2664_s11 = scalar_lea.vmem %s2663_s25, 8192  ;;  %p2665_p7 = scmp.lt.s32.totalorder %s2942_s5, %s2663_s25 }
  0x3c   : > { %p2660_p5 = pnand %p2658_p3, %p2614_p11  ;;  %p2666_p10 = scmp.lt.s32.totalorder %s2664_s11, %s2657_s30 }
  0x3e   : > { %p2661_p6 = pneg %p2660_p5  ;;  %p2667_p12 = por %p2666_p10, %p2665_p7 }
  0x40   : > { %p2668_p0 = pnand %p2667_p12, %p2661_p6 }
  0x42   : > { %2671 = shalt.err (!%p2668_p0)
}
  0x43   : > { %2276 = dma.hbm_to_vmem [thread:$0]  (!%p2890_p9), %s2938_s24, 4096, %s2942_s5, %s177_s7, %s2789_s12, %s2789_s12, %s2790_s13  }
  0x44   : > { %206 = sbr.rel (%p2929_p4) target bundleno = 2599 (0xa27), region = 32 }
  0x4b   : > { %s208_s9 = sand.u32 1, %s2770_s16   ;;  %p3801_p7 = scmp.ne.s32.totalorder %s3798_s26, 0 }
  0x4c   : > { %s2140_s6 = sshll.u32 %s208_s9, 8  ;;  %s209_s29 = scalar_lea.sflag [#allocation7], %s208_s9 }
  0x4d   : > { %s2976_s8 = scalar_lea.vmem [#allocation6], %s2140_s6 }
  0x4e   : > { %2749 = dma.done.wait (%p3801_p7), %s209_s29, 4096  }
  0x4f   : > { %2751 = vsyncadd (%p3801_p7), %s209_s29, 4294963200  ;;  %s218_s28 = scalar_lea.sflag [#allocation10], %s208_s9  ;;  %s2982_s10 = scalar_lea.vmem [#allocation9], %s2140_s6 }
  0x50   : > { %2753 = dma.done.wait (%p3801_p7), %s218_s28, 4096  }
  0x51   : > { %2755 = vsyncadd (%p3801_p7), %s218_s28, 4294963200  ;;  %p248_p9 = scmp.lt.s32.totalorder %s2778_s18, 1  ;;  %p2278_p11 = scmp.eq.s32.totalorder %s2778_s18, 0 }
  0x52   : > { %s2792_s13 = smov [#allocation11]   ;;  %s2672_s23 = scalar_lea.hbm %s3789_s0, 576 }
  0x53   : > { %s249_s12 = scalar_select %p248_p9, %s2778_s18, 1 }
  0x54   : > { %s267_s14 = sshll.u32 %s2792_s13, 4  ;;  %p2673_p4 = scmp.ne.s32.totalorder %s3789_s0, %s2672_s23  ;;  %s2991_s14 = int_to_ptr.vmem [resolvable:$true] %s267_s14 }
  0x55   : > { %s2142_s24 = sshll.u32 %s249_s12, 2  ;;  %p2678_p2 = scmp.lt.u32.totalorder %s2672_s23, %s3789_s0 }
  0x56   : > { %s2996_s15 = scalar_lea.vmem %s3792_s3, %s2142_s24  ;;  %p2674_p8 = pnand %p2673_p4, %p2278_p11 }
  0x58   : > { %p2675_p1 = pneg %p2674_p8 }
  0x5a   : > { %p2680_p13 = pnand %p2678_p2, %p2675_p1 }
  0x5c   : > { %2683 = shalt.err (!%p2680_p13)  }
  0x5d   : > { %s3010_s29 = scalar_lea.vmem %s2991_s14, 576  ;;  %p2691_p10 = scmp.lt.s32.totalorder %s2991_s14, %s2991_s14 }
  0x5e   : > { %p2685_p3 = scmp.ne.s32.totalorder %s2991_s14, %s3010_s29  ;;  %p2692_p12 = scmp.lt.s32.totalorder %s3010_s29, %s3010_s29 }
  0x60   : > { %p2686_p5 = pnand %p2685_p3, %p2278_p11  ;;  %p3023_p0 = por %p2692_p12, %p2691_p10 }
  0x62   : > { %p2687_p6 = pneg %p2686_p5 }
  0x64   : > { %p2694_p7 = pnand %p3023_p0, %p2687_p6 }
  0x66   : > { %2697 = shalt.err (!%p2694_p7)  }
  0x67   : > { %2264 = dma.hbm_to_vmem [thread:$0]  (%p2278_p11), %s3789_s0, 576, %s2991_s14, [#allocation5] }
  0x68   : > { %2757 = dma.done.wait (%p2278_p11), [#allocation5], 576 }
  0x69   : > { %2759 = vsyncadd (%p2278_p11), [#allocation5], 4294966720  ;;  %v3795_v0 = vmov 0   ;;  %v2335_v1 = vld [vmem:[%s2976_s8 + $0x4] ss:$16 sps:$4 sm:$0xff]   ;;  %v2390_v43 = vld [vmem:[#allocation11 + $0x8] sm:$0xff]  }
  0x6a   : > { %591 = vmatprep.mubr.bf16.mxu0 %v3795_v0  ;;  %757 = vst [vmem:[#allocation3] sm:$0xf] %v3795_v0  ;;  %672 = vmatprep.mubr.bf16.mxu1 %v3795_v0  ;;  %v2337_v2 = vld [vmem:[%s2976_s8 + $0xc] ss:$16 sps:$4 sm:$0xff]   ;;  %v2339_v3 = vld [vmem:[%s2976_s8] ss:$16 sps:$4 sm:$0xff]  }
  0x6b   : > { %559 = vmatprep.subr.bf16.mxu0 %v2335_v1  ;;  %v2340_v4 = vld [vmem:[%s2976_s8 + $0x8] ss:$16 sps:$4 sm:$0xff]   ;;  %640 = vmatprep.subr.bf16.mxu1 %v2337_v2  ;;  %v2341_v5 = vld [vmem:[%s2976_s8 + $0x24] ss:$16 sps:$4 sm:$0xff]   ;;  %v2343_v6 = vld [vmem:[%s2976_s8 + $0x2c] ss:$16 sps:$4 sm:$0xff]  }
  0x6c   : > { %560 = vmatpush1.bf16.msra.mxu0 %v2339_v3  ;;  %641 = vmatpush1.bf16.msra.mxu1 %v2340_v4  ;;  %v2345_v7 = vld [vmem:[%s2976_s8 + $0x20] ss:$16 sps:$4 sm:$0xff]   ;;  %v2346_v8 = vld [vmem:[%s2976_s8 + $0x28] ss:$16 sps:$4 sm:$0xff]   ;;  %v2347_v9 = vld [vmem:[%s2976_s8 + $0x44] ss:$16 sps:$4 sm:$0xff]  }
  0x6d   : > { %561 = vmatprep.subr.bf16.mxu0 %v2341_v5  ;;  %642 = vmatprep.subr.bf16.mxu1 %v2343_v6  ;;  %v2349_v10 = vld [vmem:[%s2976_s8 + $0x4c] ss:$16 sps:$4 sm:$0xff]   ;;  %v2351_v11 = vld [vmem:[%s2976_s8 + $0x40] ss:$16 sps:$4 sm:$0xff]   ;;  %v2352_v12 = vld [vmem:[%s2976_s8 + $0x48] ss:$16 sps:$4 sm:$0xff]  }
  0x6e   : > { %v2353_v13 = vld [vmem:[%s2976_s8 + $0x64] ss:$16 sps:$4 sm:$0xff]   ;;  %v2355_v14 = vld [vmem:[%s2976_s8 + $0x6c] ss:$16 sps:$4 sm:$0xff]   ;;  %v2357_v15 = vld [vmem:[%s2976_s8 + $0x60] ss:$16 sps:$4 sm:$0xff]  }
  0x6f   : > { %v2358_v16 = vld [vmem:[%s2976_s8 + $0x68] ss:$16 sps:$4 sm:$0xff]   ;;  %v2359_v17 = vld [vmem:[%s2976_s8 + $0x84] ss:$16 sps:$4 sm:$0xff]   ;;  %v2361_v18 = vld [vmem:[%s2976_s8 + $0x8c] ss:$16 sps:$4 sm:$0xff]  }
  0x70   : > { %562 = vmatpush1.bf16.msra.mxu0 %v2345_v7  ;;  %643 = vmatpush1.bf16.msra.mxu1 %v2346_v8  ;;  %v2363_v19 = vld [vmem:[%s2976_s8 + $0x80] ss:$16 sps:$4 sm:$0xff]   ;;  %v2364_v20 = vld [vmem:[%s2976_s8 + $0x88] ss:$16 sps:$4 sm:$0xff]   ;;  %v2365_v21 = vld [vmem:[%s2976_s8 + $0xa4] ss:$16 sps:$4 sm:$0xff]  }
  0x71   : > { %563 = vmatprep.subr.bf16.mxu0 %v2347_v9  ;;  %644 = vmatprep.subr.bf16.mxu1 %v2349_v10  ;;  %v2367_v22 = vld [vmem:[%s2976_s8 + $0xac] ss:$16 sps:$4 sm:$0xff]   ;;  %v2369_v23 = vld [vmem:[%s2976_s8 + $0xa0] ss:$16 sps:$4 sm:$0xff]   ;;  %v2370_v24 = vld [vmem:[%s2976_s8 + $0xa8] ss:$16 sps:$4 sm:$0xff]  }
  0x72   : > { %v2371_v25 = vld [vmem:[%s2976_s8 + $0xc4] ss:$16 sps:$4 sm:$0xff]   ;;  %v2373_v26 = vld [vmem:[%s2976_s8 + $0xcc] ss:$16 sps:$4 sm:$0xff]   ;;  %v2375_v27 = vld [vmem:[%s2976_s8 + $0xc0] ss:$16 sps:$4 sm:$0xff]  }
  0x73   : > { %v2376_v28 = vld [vmem:[%s2976_s8 + $0xc8] ss:$16 sps:$4 sm:$0xff]   ;;  %v2377_v29 = vld [vmem:[%s2976_s8 + $0xe4] ss:$16 sps:$4 sm:$0xff]   ;;  %v2379_v30 = vld [vmem:[%s2976_s8 + $0xec] ss:$16 sps:$4 sm:$0xff]  }
  0x74   : > { %564 = vmatpush1.bf16.msra.mxu0 %v2351_v11  ;;  %645 = vmatpush1.bf16.msra.mxu1 %v2352_v12  ;;  %v2381_v31 = vld [vmem:[%s2976_s8 + $0xe0] ss:$16 sps:$4 sm:$0xff]   ;;  %v2382_v32 = vld [vmem:[%s2976_s8 + $0xe8] ss:$16 sps:$4 sm:$0xff]   ;;  %v3075_v33 = vld [vmem:[%s2982_s10 + $0x4] ss:$16 sps:$4 sm:$0xff]  }
  0x75   : > { %565 = vmatprep.subr.bf16.mxu0 %v2353_v13  ;;  %646 = vmatprep.subr.bf16.mxu1 %v2355_v14  ;;  %v3078_v34 = vld [vmem:[%s2982_s10 + $0xc] ss:$16 sps:$4 sm:$0xff]   ;;  %v2383_v35 = vld [vmem:[#allocation11] sm:$0xff]   ;;  %v3089_v38 = vld [vmem:[%s2982_s10 + $0x8] ss:$16 sps:$4 sm:$0xff]   ;;  %p3739_p9 = scmp.eq.s32.totalorder %s2130_s21, 1 }
  0x76   : > { %v3081_v36 = vld [vmem:[%s2982_s10] ss:$16 sps:$4 sm:$0xff]   ;;  %v3085_v37 = vld [vmem:[%s2982_s10 + $0x24] ss:$16 sps:$4 sm:$0xff]   ;;  %v3092_v39 = vld [vmem:[%s2982_s10 + $0x2c] ss:$16 sps:$4 sm:$0xff]  }
  0x77   : > { %v3096_v40 = vld [vmem:[%s2982_s10 + $0x20] ss:$16 sps:$4 sm:$0xff]   ;;  %v3102_v41 = vld [vmem:[%s2982_s10 + $0x44] ss:$16 sps:$4 sm:$0xff]   ;;  %v3106_v42 = vld [vmem:[%s2982_s10 + $0x28] ss:$16 sps:$4 sm:$0xff]   ;;  %p2700_p11 = pnand %p2685_p3, %p3739_p9 }
  0x78   : > { %566 = vmatpush1.bf16.msra.mxu0 %v2357_v15  ;;  %647 = vmatpush1.bf16.msra.mxu1 %v2358_v16  ;;  %v3111_v44 = vld [vmem:[%s2982_s10 + $0x40] ss:$16 sps:$4 sm:$0xff]   ;;  %v3115_v45 = vld [vmem:[%s2982_s10 + $0x64] ss:$16 sps:$4 sm:$0xff]   ;;  %v3119_v46 = vld [vmem:[%s2982_s10 + $0x4c] ss:$16 sps:$4 sm:$0xff]  }
  0x79   : > { %567 = vmatprep.subr.bf16.mxu0 %v2359_v17  ;;  %648 = vmatprep.subr.bf16.mxu1 %v2361_v18  ;;  %v3122_v47 = vld [vmem:[%s2982_s10 + $0x48] ss:$16 sps:$4 sm:$0xff]   ;;  %v3127_v48 = vld [vmem:[%s2982_s10 + $0x60] ss:$16 sps:$4 sm:$0xff]   ;;  %v3130_v49 = vld [vmem:[%s2982_s10 + $0x6c] ss:$16 sps:$4 sm:$0xff]   ;;  %p2701_p4 = pneg %p2700_p11 }
  0x7a   : > { %v3135_v50 = vld [vmem:[%s2982_s10 + $0x84] ss:$16 sps:$4 sm:$0xff]   ;;  %v3142_v52 = vld [vmem:[%s2982_s10 + $0x80] ss:$16 sps:$4 sm:$0xff]   ;;  %v3145_v53 = vld [vmem:[%s2982_s10 + $0x68] ss:$16 sps:$4 sm:$0xff]  }
  0x7b   : > { %v2402_v51 = vld [vmem:[#allocation11 + $0x10] sm:$0xff]   ;;  %v3149_v54 = vld [vmem:[%s2982_s10 + $0x8c] ss:$16 sps:$4 sm:$0xff]   ;;  %v3157_v56 = vld [vmem:[%s2982_s10 + $0x88] ss:$16 sps:$4 sm:$0xff]   ;;  %p2708_p8 = pnand %p2701_p4, %p3023_p0 }
  0x7c   : > { %568 = vmatpush1.bf16.msra.mxu0 %v2363_v19  ;;  %649 = vmatpush1.bf16.msra.mxu1 %v2364_v20  ;;  %v3152_v55 = vld [vmem:[%s2982_s10 + $0xa4] ss:$16 sps:$4 sm:$0xff]   ;;  %v3160_v57 = vld [vmem:[%s2982_s10 + $0xa0] ss:$16 sps:$4 sm:$0xff]   ;;  %v3165_v58 = vld [vmem:[%s2982_s10 + $0xac] ss:$16 sps:$4 sm:$0xff]  }
  0x7d   : > { %569 = vmatprep.subr.bf16.mxu0 %v2365_v21  ;;  %650 = vmatprep.subr.bf16.mxu1 %v2367_v22  ;;  %v3168_v59 = vld [vmem:[%s2982_s10 + $0xc4] ss:$16 sps:$4 sm:$0xff]   ;;  %v2413_v60 = vld [vmem:[#allocation11 + $0x18] sm:$0xff]   ;;  %v3180_v62 = vld [vmem:[%s2982_s10 + $0xc0] ss:$16 sps:$4 sm:$0xff]  }
  0x7e   : > { %v3175_v61 = vld [vmem:[%s2982_s10 + $0xa8] ss:$16 sps:$4 sm:$0xff]   ;;  %v3183_v63 = vld [vmem:[%s2982_s10 + $0xcc] ss:$16 sps:$4 sm:$0xff]   ;;  %v3186_v1 = vld [vmem:[%s2982_s10 + $0xe4] ss:$16 sps:$4 sm:$0xff]  }
  0x7f   : > { %v3191_v2 = vld [vmem:[%s2982_s10 + $0xc8] ss:$16 sps:$4 sm:$0xff]   ;;  %v3196_v3 = vld [vmem:[%s2982_s10 + $0xe0] ss:$16 sps:$4 sm:$0xff]   ;;  %v3199_v4 = vld [vmem:[%s2982_s10 + $0xec] ss:$16 sps:$4 sm:$0xff]  }
  0x80   : > { %570 = vmatpush1.bf16.msra.mxu0 %v2369_v23  ;;  %651 = vmatpush1.bf16.msra.mxu1 %v2370_v24  ;;  %v2426_v5 = vld [vmem:[#allocation11 + $0x20] ss:$0 sps:$4 sm:$0xff]   ;;  %v3205_v6 = vld [vmem:[%s2982_s10 + $0xe8] ss:$16 sps:$4 sm:$0xff]   ;;  %v763_v7 = vld [vmem:[#allocation3] sm:$0xf] }
  0x81   : > { %571 = vmatprep.subr.bf16.mxu0 %v2371_v25  ;;  %652 = vmatprep.subr.bf16.mxu1 %v2373_v26 }
  0x84   : > { %572 = vmatpush1.bf16.msra.mxu0 %v2375_v27  ;;  %653 = vmatpush1.bf16.msra.mxu1 %v2376_v28 }
  0x85   : > { %573 = vmatprep.subr.bf16.mxu0 %v2377_v29  ;;  %654 = vmatprep.subr.bf16.mxu1 %v2379_v30 }
  0x88   : > { %574 = vmatpush1.bf16.msra.mxu0 %v2381_v31  ;;  %655 = vmatpush1.bf16.msra.mxu1 %v2382_v32  ;;  %v351_v32 = vlaneseq }
  0x89   : > { %924 = vmatprep.subr.bf16.mxu0 %v3075_v33  ;;  %965 = vmatprep.subr.bf16.mxu1 %v3078_v34 }
  0x8b   : > { %592 = vmatmul.mubr.bf16.vlgmr.msra.gmra.mrb[0].mxu0 %v2383_v35  ;;  %673 = vmatmul.mubr.bf16.vlgmr.msra.gmra.mrb[0].mxu1 %v2383_v35 }
  0x8c   : > { %925 = vmatpush1.bf16.msra.mxu0 %v3081_v36  ;;  %601 = vmatprep.mubr.bf16.mxu0 %v3795_v0 }
  0x8d   : > { %926 = vmatprep.subr.bf16.mxu0 %v3085_v37  ;;  %682 = vmatprep.mubr.bf16.mxu1 %v3795_v0 }
  0x8e   : > { %966 = vmatpush1.bf16.msra.mxu1 %v3089_v38 }
  0x8f   : > { %967 = vmatprep.subr.bf16.mxu1 %v3092_v39 }
  0x90   : > { %927 = vmatpush1.bf16.msra.mxu0 %v3096_v40 }
  0x91   : > { %928 = vmatprep.subr.bf16.mxu0 %v3102_v41 }
  0x92   : > { %968 = vmatpush1.bf16.msra.mxu1 %v3106_v42 }
  0x93   : > { %602 = vmatmul.mubr.bf16.gmra.mrb[4].mxu0 %v2390_v43  ;;  %683 = vmatmul.mubr.bf16.gmra.mrb[4].mxu1 %v2390_v43 }
  0x94   : > { %929 = vmatpush1.bf16.msra.mxu0 %v3111_v44  ;;  %611 = vmatprep.mubr.bf16.mxu0 %v3795_v0 }
  0x95   : > { %692 = vmatprep.mubr.bf16.mxu1 %v3795_v0  ;;  %930 = vmatprep.subr.bf16.mxu0 %v3115_v45 }
  0x96   : > { %969 = vmatprep.subr.bf16.mxu1 %v3119_v46 }
  0x97   : > { %970 = vmatpush1.bf16.msra.mxu1 %v3122_v47 }
  0x98   : > { %931 = vmatpush1.bf16.msra.mxu0 %v3127_v48  ;;  %971 = vmatprep.subr.bf16.mxu1 %v3130_v49 }
  0x99   : > { %932 = vmatprep.subr.bf16.mxu0 %v3135_v50 }
  0x9b   : > { %612 = vmatmul.mubr.bf16.gmra.mrb[8].mxu0 %v2402_v51  ;;  %693 = vmatmul.mubr.bf16.gmra.mrb[8].mxu1 %v2402_v51 }
  0x9c   : > { %933 = vmatpush1.bf16.msra.mxu0 %v3142_v52  ;;  %972 = vmatpush1.bf16.msra.mxu1 %v3145_v53 }
  0x9d   : > { %621 = vmatprep.mubr.bf16.mxu0 %v3795_v0  ;;  %702 = vmatprep.mubr.bf16.mxu1 %v3795_v0 }
  0x9e   : > { %973 = vmatprep.subr.bf16.mxu1 %v3149_v54  ;;  %934 = vmatprep.subr.bf16.mxu0 %v3152_v55 }
  0xa0   : > { %974 = vmatpush1.bf16.msra.mxu1 %v3157_v56  ;;  %935 = vmatpush1.bf16.msra.mxu0 %v3160_v57 }
  0xa1   : > { %975 = vmatprep.subr.bf16.mxu1 %v3165_v58  ;;  %936 = vmatprep.subr.bf16.mxu0 %v3168_v59 }
  0xa3   : > { %622 = vmatmul.mubr.bf16.gmra.mrb[12].mxu0 %v2413_v60  ;;  %703 = vmatmul.mubr.bf16.gmra.mrb[12].mxu1 %v2413_v60 }
  0xa4   : > { %976 = vmatpush1.bf16.msra.mxu1 %v3175_v61  ;;  %631 = vmatprep.mubr.bf16.mxu0 %v3795_v0 }
  0xa5   : > { %712 = vmatprep.mubr.bf16.mxu1 %v3795_v0  ;;  %937 = vmatpush1.bf16.msra.mxu0 %v3180_v62 }
  0xa6   : > { %977 = vmatprep.subr.bf16.mxu1 %v3183_v63  ;;  %938 = vmatprep.subr.bf16.mxu0 %v3186_v1 }
  0xa8   : > { %978 = vmatpush1.bf16.msra.mxu1 %v3191_v2 }
  0xa9   : > { %939 = vmatpush1.bf16.msra.mxu0 %v3196_v3  ;;  %979 = vmatprep.subr.bf16.mxu1 %v3199_v4 }
  0xaa   : > { %1045 = vmatprep.subr.bf16.mxu0 %v3075_v33 }
  0xab   : > { %632 = vmatmul.mubr.bf16.gmra.mrb[16].mxu0 %v2426_v5  ;;  %713 = vmatmul.mubr.bf16.gmra.mrb[16].mxu1 %v2426_v5 }
  0xac   : > { %980 = vmatpush1.bf16.msra.mxu1 %v3205_v6  ;;  %956 = vmatprep.mubr.bf16.mxu0 %v3795_v0 }
  0xad   : > { %997 = vmatprep.mubr.bf16.mxu1 %v3795_v0  ;;  %1086 = vmatprep.subr.bf16.mxu1 %v3078_v34 }
  0xb3   : > { %957 = vmatmul.mubr.bf16.vlgmr.msra.gmra.mrb[20].mxu0 %v763_v7  ;;  %998 = vmatmul.mubr.bf16.vlgmr.msra.gmra.mrb[20].mxu1 %v763_v7 }
  0xb4   : > { %1046 = vmatpush1.bf16.msra.mxu0 %v3081_v36  ;;  %1087 = vmatpush1.bf16.msra.mxu1 %v3089_v38 }
  0xb5   : > { %1047 = vmatprep.subr.bf16.mxu0 %v3085_v37  ;;  %1088 = vmatprep.subr.bf16.mxu1 %v3092_v39 }
  0xb6   : > { %1077 = vmatprep.mubr.bf16.mxu0 %v3795_v0  ;;  %1118 = vmatprep.mubr.bf16.mxu1 %v3795_v0  ;;  %v352_v0 = vshrl.u32 %v351_v32, 7 }
  0xb8   : > { %1048 = vmatpush1.bf16.msra.mxu0 %v3096_v40  ;;  %1089 = vmatpush1.bf16.msra.mxu1 %v3106_v42 }
  0xb9   : > { %1049 = vmatprep.subr.bf16.mxu0 %v3102_v41  ;;  %1090 = vmatprep.subr.bf16.mxu1 %v3119_v46 }
  0xbc   : > { %1050 = vmatpush1.bf16.msra.mxu0 %v3111_v44  ;;  %1091 = vmatpush1.bf16.msra.mxu1 %v3122_v47 }
  0xbd   : > { %1051 = vmatprep.subr.bf16.mxu0 %v3115_v45  ;;  %1092 = vmatprep.subr.bf16.mxu1 %v3130_v49 }
  0xc0   : > { %1052 = vmatpush1.bf16.msra.mxu0 %v3127_v48  ;;  %1093 = vmatpush1.bf16.msra.mxu1 %v3145_v53 }
  0xc1   : > { %1053 = vmatprep.subr.bf16.mxu0 %v3135_v50  ;;  %1094 = vmatprep.subr.bf16.mxu1 %v3149_v54 }
  0xc4   : > { %1054 = vmatpush1.bf16.msra.mxu0 %v3142_v52  ;;  %1095 = vmatpush1.bf16.msra.mxu1 %v3157_v56 }
  0xc5   : > { %1055 = vmatprep.subr.bf16.mxu0 %v3152_v55  ;;  %1096 = vmatprep.subr.bf16.mxu1 %v3165_v58 }
  0xc8   : > { %1056 = vmatpush1.bf16.msra.mxu0 %v3160_v57  ;;  %1097 = vmatpush1.bf16.msra.mxu1 %v3175_v61 }
  0xc9   : > { %1057 = vmatprep.subr.bf16.mxu0 %v3168_v59  ;;  %1098 = vmatprep.subr.bf16.mxu1 %v3183_v63 }
  0xcc   : > { %1058 = vmatpush1.bf16.msra.mxu0 %v3180_v62  ;;  %1099 = vmatpush1.bf16.msra.mxu1 %v3191_v2 }
  0xcd   : > { %1059 = vmatprep.subr.bf16.mxu0 %v3186_v1  ;;  %1100 = vmatprep.subr.bf16.mxu1 %v3199_v4 }
  0xd0   : > { %1060 = vmatpush1.bf16.msra.mxu0 %v3196_v3  ;;  %1101 = vmatpush1.bf16.msra.mxu1 %v3205_v6 }
  0xd1   : > { %1167 = vmatprep.subr.bf16.mxu0 %v3075_v33  ;;  %1208 = vmatprep.subr.bf16.mxu1 %v3078_v34 }
 0x15e   : > { %v593_v8 = vpop.f32.mrb[0].mxu0  ;;  %v674_v9 = vpop.f32.mrb[0].mxu1 }
 0x15f   : > { %v595_v10 = vpop.f32.mrb[1].mxu0  ;;  %v676_v11 = vpop.f32.mrb[1].mxu1 }
 0x160   : > { %v3248_v12 = vpop.f32.mrb[2].mxu0  ;;  %v3250_v13 = vpop.f32.mrb[2].mxu1 }
 0x161   : > { %v3252_v14 = vpop.f32.mrb[3].mxu0  ;;  %v3254_v15 = vpop.f32.mrb[3].mxu1 }
 0x166   : > { %v3256_v16 = vpop.f32.mrb[4].mxu0  ;;  %v3258_v17 = vpop.f32.mrb[4].mxu1 }
 0x167   : > { %v3260_v18 = vpop.f32.mrb[5].mxu0  ;;  %v3262_v19 = vpop.f32.mrb[5].mxu1 }
 0x168   : > { %3803 = vst [vmem:[#allocation20_spill] sm:$0xff] %v3260_v18  ;;  %3804 = vst [vmem:[#allocation21_spill] sm:$0xff] %v3262_v19  ;;  %v3264_v20 = vpop.f32.mrb[6].mxu0  ;;  %v3266_v21 = vpop.f32.mrb[6].mxu1 }
 0x169   : > { %3805 = vst [vmem:[#allocation22_spill] sm:$0xff] %v3264_v20  ;;  %3806 = vst [vmem:[#allocation23_spill] sm:$0xff] %v3266_v21  ;;  %v3268_v22 = vpop.f32.mrb[7].mxu0  ;;  %v3270_v23 = vpop.f32.mrb[7].mxu1 }
 0x16a   : > { %3807 = vst [vmem:[#allocation24_spill] sm:$0xff] %v3268_v22  ;;  %3808 = vst [vmem:[#allocation25_spill] sm:$0xff] %v3270_v23 }
 0x16e   : > { %v3272_v24 = vpop.f32.mrb[8].mxu0  ;;  %v3274_v25 = vpop.f32.mrb[8].mxu1 }
 0x16f   : > { %3809 = vst [vmem:[#allocation26_spill] sm:$0xff] %v3272_v24  ;;  %3810 = vst [vmem:[#allocation27_spill] sm:$0xff] %v3274_v25  ;;  %v3276_v26 = vpop.f32.mrb[9].mxu0  ;;  %v3278_v27 = vpop.f32.mrb[9].mxu1 }
 0x170   : > { %3811 = vst [vmem:[#allocation28_spill] sm:$0xff] %v3276_v26  ;;  %3812 = vst [vmem:[#allocation29_spill] sm:$0xff] %v3278_v27  ;;  %v3280_v28 = vpop.f32.mrb[10].mxu0  ;;  %v3282_v29 = vpop.f32.mrb[10].mxu1  ;;  %v340_v27 = vld [vmem:[%s2996_s15] sm:$0xf] }
 0x171   : > { %3813 = vst [vmem:[#allocation30_spill] sm:$0xff] %v3280_v28  ;;  %3814 = vst [vmem:[#allocation31_spill] sm:$0xff] %v3282_v29  ;;  %v3284_v30 = vpop.f32.mrb[11].mxu0  ;;  %v3286_v31 = vpop.f32.mrb[11].mxu1  ;;  %v357_v26 = vsub.s32 1, %v352_v0 }
 0x172   : > { %3815 = vst [vmem:[#allocation32_spill] sm:$0xff] %v3284_v30  ;;  %3816 = vst [vmem:[#allocation33_spill] sm:$0xff] %v3286_v31  ;;  %v353_v30 = vsub.s32 0, %v352_v0  ;;  %v361_v31 = vsub.s32 2, %v352_v0 }
 0x174   : > { %v3305_v25 = vrot.slane %v340_v27, %v353_v30 }
 0x176   : > { %v3288_v35 = vpop.f32.mrb[12].mxu0  ;;  %v3290_v43 = vpop.f32.mrb[12].mxu1 }
 0x177   : > { %3817 = vst [vmem:[#allocation34_spill] sm:$0xff] %v3288_v35  ;;  %3818 = vst [vmem:[#allocation35_spill] sm:$0xff] %v3290_v43  ;;  %v3292_v51 = vpop.f32.mrb[13].mxu0  ;;  %v3294_v60 = vpop.f32.mrb[13].mxu1  ;;  %v365_v35 = vsub.s32 3, %v352_v0  ;;  %v3307_v43 = vrot.slane %v340_v27, %v361_v31 }
 0x178   : > { %3819 = vst [vmem:[#allocation36_spill] sm:$0xff] %v3292_v51  ;;  %3820 = vst [vmem:[#allocation37_spill] sm:$0xff] %v3294_v60  ;;  %v3296_v5 = vpop.f32.mrb[14].mxu0  ;;  %v3298_v7 = vpop.f32.mrb[14].mxu1  ;;  %v3309_v51 = vrot.slane %v340_v27, %v357_v26 }
 0x179   : > { %3821 = vst [vmem:[#allocation38_spill] sm:$0xff] %v3296_v5  ;;  %3822 = vst [vmem:[#allocation39_spill] sm:$0xff] %v3298_v7  ;;  %v3300_v28 = vpop.f32.mrb[15].mxu0  ;;  %v3302_v29 = vpop.f32.mrb[15].mxu1  ;;  %v3311_v60 = vrot.slane %v340_v27, %v365_v35  ;;  %v594_v7 = vadd.f32 %v593_v8, %v3305_v25  ;;  %v675_v32 = vadd.f32 %v674_v9, %v3307_v43 }
 0x17a   : > { %3823 = vst [vmem:[#allocation40_spill] sm:$0xff] %v3300_v28  ;;  %3824 = vst [vmem:[#allocation41_spill] sm:$0xff] %v3302_v29  ;;  %v596_v28 = vadd.f32 %v595_v10, %v3309_v51 }
 0x17b   : > { %v677_v29 = vadd.f32 %v676_v11, %v3311_v60 }
 0x186   : > { %v958_v5 = vpop.f32.mrb[20].mxu0  ;;  %v999_v24 = vpop.f32.mrb[20].mxu1 }
 0x187   : > { %v1006_v23 = vadd.f32 %v958_v5, %v594_v7  ;;  %v1008_v0 = vadd.f32 %v999_v24, %v675_v32  ;;  %v960_v30 = vpop.f32.mrb[21].mxu0  ;;  %v1001_v22 = vpop.f32.mrb[21].mxu1 }
 0x188   : > { %v1007_v31 = vadd.f32 %v960_v30, %v596_v28  ;;  %v1009_v21 = vadd.f32 %v1001_v22, %v677_v29  ;;  %v962_v26 = vpop.f32.mrb[22].mxu0  ;;  %v1003_v20 = vpop.f32.mrb[22].mxu1 }
 0x189   : > { %v2213_v27 = vmul.f32 -1.442695, %v1006_v23  ;;  %v963_v35 = vpop.f32.mrb[23].mxu0  ;;  %v1004_v19 = vpop.f32.mrb[23].mxu1  ;;  %v2215_v9 = vmul.f32 -1.442695, %v1008_v0  ;;  %v598_v26 = vadd.f32 %v3248_v12, %v3305_v25 }
 0x18a   : > { %v2214_v8 = vmul.f32 -1.442695, %v1007_v31  ;;  %v3825_v31 = vmov 0   ;;  %v600_v35 = vadd.f32 %v3252_v14, %v3309_v51 }
 0x18b   : > { %2436 = vpow2.f32 %v2213_v27  ;;  %v679_v27 = vadd.f32 %v3250_v13, %v3307_v43 }
 0x18c   : > { %2438 = vpow2.f32 %v2214_v8  ;;  %v681_v8 = vadd.f32 %v3254_v15, %v3311_v60 }
 0x18d   : > { %2440 = vtanh.f32 %v1009_v21 }
 0x18e   : > { %2442 = vpow2.f32 %v2215_v9 }
 0x195   : > { %v2437_v10 = vpop.eup %2436 }
 0x196   : > { %v1019_v18 = vadd.f32 1.0, %v2437_v10  ;;  %v2439_v11 = vpop.eup %2438 }
 0x197   : > { %v1020_v24 = vadd.f32 1.0, %v2439_v11  ;;  %v2441_v5 = vpop.eup %2440 }
 0x198   : > { %2444 = vrcp.f32 %v1019_v18  ;;  %v2443_v28 = vpop.eup %2442 }
 0x199   : > { %2446 = vrcp.f32 %v1020_v24  ;;  %v1021_v23 = vadd.f32 1.0, %v2443_v28 }
 0x19b   : > { %2448 = vrcp.f32 %v1021_v23 }
 0x1a2   : > { %v2445_v22 = vpop.eup %2444 }
 0x1a3   : > { %v1031_v29 = vmul.f32 %v2445_v22, %v2441_v5  ;;  %v2447_v20 = vpop.eup %2446 }
 0x1a4   : > { %v1030_v7 = vmul.f32 0.0, %v2447_v20 }
 0x1a5   : > { %v2449_v32 = vpop.eup %2448 }
 0x1a6   : > { %v3317_v19 = vadd.f32 %v1031_v29, %v1030_v7 }
 0x1a8   : > { %2450 = vtanh.f32 %v3317_v19 }
 0x1b2   : > { %v2451_v0 = vpop.eup %2450 }
 0x1b3   : > { %v1034_v21 = vmul.f32 %v2451_v0, %v2449_v32 }
 0x1b5   : > { %v1035_v30 = vpack.c.bf16 %v1034_v21, %v1034_v21 }
 0x1b7   : > { %1037 = vst [vmem:[#allocation3] sm:$0xf] %v1035_v30  ;;  %1038 = vst [vmem:[#allocation11] sm:$0xf] %v1035_v30 }
 0x1be   : > { %v1044_v18 = vld [vmem:[#allocation3] sm:$0xf] }
 0x1bf   : > { %1078 = vmatmul.mubr.bf16.vlgmr.msra.gmra.mrb[24].mxu0 %v1044_v18  ;;  %1119 = vmatmul.mubr.bf16.vlgmr.msra.gmra.mrb[24].mxu1 %v1044_v18 }
 0x1c0   : > { %1168 = vmatpush1.bf16.msra.mxu0 %v3081_v36  ;;  %1209 = vmatpush1.bf16.msra.mxu1 %v3089_v38 }
 0x1c1   : > { %1169 = vmatprep.subr.bf16.mxu0 %v3085_v37  ;;  %1210 = vmatprep.subr.bf16.mxu1 %v3092_v39 }
 0x1c2   : > { %1199 = vmatprep.mubr.bf16.mxu0 %v3825_v31  ;;  %1240 = vmatprep.mubr.bf16.mxu1 %v3825_v31 }
 0x1c4   : > { %1170 = vmatpush1.bf16.msra.mxu0 %v3096_v40  ;;  %1211 = vmatpush1.bf16.msra.mxu1 %v3106_v42 }
 0x1c5   : > { %1171 = vmatprep.subr.bf16.mxu0 %v3102_v41  ;;  %1212 = vmatprep.subr.bf16.mxu1 %v3119_v46 }
 0x1c8   : > { %1172 = vmatpush1.bf16.msra.mxu0 %v3111_v44  ;;  %1213 = vmatpush1.bf16.msra.mxu1 %v3122_v47 }
 0x1c9   : > { %1173 = vmatprep.subr.bf16.mxu0 %v3115_v45  ;;  %1214 = vmatprep.subr.bf16.mxu1 %v3130_v49 }
 0x1cc   : > { %1174 = vmatpush1.bf16.msra.mxu0 %v3127_v48  ;;  %1215 = vmatpush1.bf16.msra.mxu1 %v3145_v53 }
 0x1cd   : > { %1175 = vmatprep.subr.bf16.mxu0 %v3135_v50  ;;  %1216 = vmatprep.subr.bf16.mxu1 %v3149_v54 }
 0x1d0   : > { %1176 = vmatpush1.bf16.msra.mxu0 %v3142_v52  ;;  %1217 = vmatpush1.bf16.msra.mxu1 %v3157_v56 }
 0x1d1   : > { %1177 = vmatprep.subr.bf16.mxu0 %v3152_v55  ;;  %1218 = vmatprep.subr.bf16.mxu1 %v3165_v58 }
 0x1d4   : > { %1178 = vmatpush1.bf16.msra.mxu0 %v3160_v57  ;;  %1219 = vmatpush1.bf16.msra.mxu1 %v3175_v61 }
 0x1d5   : > { %1179 = vmatprep.subr.bf16.mxu0 %v3168_v59  ;;  %1220 = vmatprep.subr.bf16.mxu1 %v3183_v63 }
 0x1d8   : > { %1180 = vmatpush1.bf16.msra.mxu0 %v3180_v62  ;;  %1221 = vmatpush1.bf16.msra.mxu1 %v3191_v2 }
 0x1d9   : > { %1181 = vmatprep.subr.bf16.mxu0 %v3186_v1  ;;  %1222 = vmatprep.subr.bf16.mxu1 %v3199_v4 }
 0x1dc   : > { %1182 = vmatpush1.bf16.msra.mxu0 %v3196_v3  ;;  %1223 = vmatpush1.bf16.msra.mxu1 %v3205_v6 }
 0x1dd   : > { %1289 = vmatprep.subr.bf16.mxu0 %v3075_v33  ;;  %1330 = vmatprep.subr.bf16.mxu1 %v3078_v34 }
 0x292   : > { %v1079_v9 = vpop.f32.mrb[24].mxu0  ;;  %v1120_v10 = vpop.f32.mrb[24].mxu1 }
 0x293   : > { %v1127_v11 = vadd.f32 %v1079_v9, %v598_v26  ;;  %v1129_v24 = vadd.f32 %v1120_v10, %v679_v27  ;;  %v1081_v5 = vpop.f32.mrb[25].mxu0  ;;  %v1122_v28 = vpop.f32.mrb[25].mxu1 }
 0x294   : > { %v1128_v22 = vadd.f32 %v1081_v5, %v600_v35  ;;  %v1130_v29 = vadd.f32 %v1122_v28, %v681_v8  ;;  %v1083_v20 = vpop.f32.mrb[26].mxu0  ;;  %v1124_v23 = vpop.f32.mrb[26].mxu1 }
 0x295   : > { %v2216_v12 = vmul.f32 -1.442695, %v1127_v11  ;;  %v1084_v7 = vpop.f32.mrb[27].mxu0  ;;  %v1125_v32 = vpop.f32.mrb[27].mxu1  ;;  %v2218_v14 = vmul.f32 -1.442695, %v1129_v24  ;;  %v685_v20 = vadd.f32 %v3258_v17, %v3307_v43 }
 0x296   : > { %v2217_v13 = vmul.f32 -1.442695, %v1128_v22  ;;  %v3826_v23 = vld [vmem:[#allocation20_spill] sm:$0xff]  ;;  %v3827_v7 = vld [vmem:[#allocation21_spill] sm:$0xff] }
 0x297   : > { %2452 = vpow2.f32 %v2216_v12  ;;  %v606_v12 = vadd.f32 %v3826_v23, %v3309_v51  ;;  %v687_v32 = vadd.f32 %v3827_v7, %v3311_v60 }
 0x298   : > { %2454 = vpow2.f32 %v2217_v13 }
 0x299   : > { %2456 = vtanh.f32 %v1130_v29 }
 0x29a   : > { %2458 = vpow2.f32 %v2218_v14 }
 0x2a1   : > { %v2453_v0 = vpop.eup %2452 }
 0x2a2   : > { %v1140_v21 = vadd.f32 1.0, %v2453_v0  ;;  %v2455_v15 = vpop.eup %2454 }
 0x2a3   : > { %v1141_v30 = vadd.f32 1.0, %v2455_v15  ;;  %v2457_v18 = vpop.eup %2456 }
 0x2a4   : > { %2460 = vrcp.f32 %v1140_v21  ;;  %v2459_v26 = vpop.eup %2458 }
 0x2a5   : > { %2462 = vrcp.f32 %v1141_v30  ;;  %v1142_v9 = vadd.f32 1.0, %v2459_v26 }
 0x2a7   : > { %2464 = vrcp.f32 %v1142_v9 }
 0x2ae   : > { %v2461_v27 = vpop.eup %2460 }
 0x2af   : > { %v1152_v35 = vmul.f32 %v2461_v27, %v2457_v18  ;;  %v2463_v8 = vpop.eup %2462 }
 0x2b0   : > { %v1151_v10 = vmul.f32 %v2463_v8, %v3317_v19  ;;  %v604_v19 = vadd.f32 %v3256_v16, %v3305_v25 }
 0x2b1   : > { %v2465_v24 = vpop.eup %2464 }
 0x2b2   : > { %v3363_v11 = vadd.f32 %v1152_v35, %v1151_v10 }
 0x2b4   : > { %2466 = vtanh.f32 %v3363_v11 }
 0x2be   : > { %v2467_v5 = vpop.eup %2466 }
 0x2bf   : > { %v1155_v28 = vmul.f32 %v2467_v5, %v2465_v24 }
 0x2c1   : > { %v1156_v22 = vpack.c.bf16 %v1155_v28, %v1155_v28 }
 0x2c3   : > { %1158 = vst [vmem:[#allocation3] sm:$0xf] %v1156_v22  ;;  %1160 = vst [vmem:[#allocation11 + $0x4] sm:$0xf] %v1156_v22 }
 0x2ca   : > { %v1166_v29 = vld [vmem:[#allocation3] sm:$0xf] }
 0x2cb   : > { %1200 = vmatmul.mubr.bf16.vlgmr.msra.gmra.mrb[28].mxu0 %v1166_v29  ;;  %1241 = vmatmul.mubr.bf16.vlgmr.msra.gmra.mrb[28].mxu1 %v1166_v29 }
 0x2cc   : > { %1290 = vmatpush1.bf16.msra.mxu0 %v3081_v36  ;;  %1331 = vmatpush1.bf16.msra.mxu1 %v3089_v38 }
 0x2cd   : > { %1291 = vmatprep.subr.bf16.mxu0 %v3085_v37  ;;  %1332 = vmatprep.subr.bf16.mxu1 %v3092_v39 }
 0x2ce   : > { %1321 = vmatprep.mubr.bf16.mxu0 %v3825_v31  ;;  %1362 = vmatprep.mubr.bf16.mxu1 %v3825_v31 }
 0x2d0   : > { %1292 = vmatpush1.bf16.msra.mxu0 %v3096_v40  ;;  %1333 = vmatpush1.bf16.msra.mxu1 %v3106_v42 }
 0x2d1   : > { %1293 = vmatprep.subr.bf16.mxu0 %v3102_v41  ;;  %1334 = vmatprep.subr.bf16.mxu1 %v3119_v46 }
 0x2d4   : > { %1294 = vmatpush1.bf16.msra.mxu0 %v3111_v44  ;;  %1335 = vmatpush1.bf16.msra.mxu1 %v3122_v47 }
 0x2d5   : > { %1295 = vmatprep.subr.bf16.mxu0 %v3115_v45  ;;  %1336 = vmatprep.subr.bf16.mxu1 %v3130_v49 }
 0x2d8   : > { %1296 = vmatpush1.bf16.msra.mxu0 %v3127_v48  ;;  %1337 = vmatpush1.bf16.msra.mxu1 %v3145_v53 }
 0x2d9   : > { %1297 = vmatprep.subr.bf16.mxu0 %v3135_v50  ;;  %1338 = vmatprep.subr.bf16.mxu1 %v3149_v54 }
 0x2dc   : > { %1298 = vmatpush1.bf16.msra.mxu0 %v3142_v52  ;;  %1339 = vmatpush1.bf16.msra.mxu1 %v3157_v56 }
 0x2dd   : > { %1299 = vmatprep.subr.bf16.mxu0 %v3152_v55  ;;  %1340 = vmatprep.subr.bf16.mxu1 %v3165_v58 }
 0x2e0   : > { %1300 = vmatpush1.bf16.msra.mxu0 %v3160_v57  ;;  %1341 = vmatpush1.bf16.msra.mxu1 %v3175_v61 }
 0x2e1   : > { %1301 = vmatprep.subr.bf16.mxu0 %v3168_v59  ;;  %1342 = vmatprep.subr.bf16.mxu1 %v3183_v63 }
 0x2e4   : > { %1302 = vmatpush1.bf16.msra.mxu0 %v3180_v62  ;;  %1343 = vmatpush1.bf16.msra.mxu1 %v3191_v2 }
 0x2e5   : > { %1303 = vmatprep.subr.bf16.mxu0 %v3186_v1  ;;  %1344 = vmatprep.subr.bf16.mxu1 %v3199_v4 }
 0x2e8   : > { %1304 = vmatpush1.bf16.msra.mxu0 %v3196_v3  ;;  %1345 = vmatpush1.bf16.msra.mxu1 %v3205_v6 }
 0x2e9   : > { %1411 = vmatprep.subr.bf16.mxu0 %v3075_v33  ;;  %1452 = vmatprep.subr.bf16.mxu1 %v3078_v34 }
 0x39e   : > { %v1201_v13 = vpop.f32.mrb[28].mxu0  ;;  %v1242_v14 = vpop.f32.mrb[28].mxu1 }
 0x39f   : > { %v1249_v0 = vadd.f32 %v1201_v13, %v604_v19  ;;  %v1251_v21 = vadd.f32 %v1242_v14, %v685_v20  ;;  %v1203_v15 = vpop.f32.mrb[29].mxu0  ;;  %v1244_v30 = vpop.f32.mrb[29].mxu1 }
 0x3a0   : > { %v1250_v18 = vadd.f32 %v1203_v15, %v606_v12  ;;  %v1252_v26 = vadd.f32 %v1244_v30, %v687_v32  ;;  %v1205_v27 = vpop.f32.mrb[30].mxu0  ;;  %v1246_v35 = vpop.f32.mrb[30].mxu1 }
 0x3a1   : > { %v2219_v16 = vmul.f32 -1.442695, %v1249_v0  ;;  %v1206_v8 = vpop.f32.mrb[31].mxu0  ;;  %v1247_v9 = vpop.f32.mrb[31].mxu1  ;;  %v2221_v10 = vmul.f32 -1.442695, %v1251_v21 }
 0x3a2   : > { %v2220_v17 = vmul.f32 -1.442695, %v1250_v18  ;;  %v3830_v35 = vld [vmem:[#allocation24_spill] sm:$0xff]  ;;  %v3831_v8 = vld [vmem:[#allocation25_spill] sm:$0xff] }
 0x3a3   : > { %2468 = vpow2.f32 %v2219_v16  ;;  %v610_v16 = vadd.f32 %v3830_v35, %v3309_v51  ;;  %v691_v9 = vadd.f32 %v3831_v8, %v3311_v60 }
 0x3a4   : > { %2470 = vpow2.f32 %v2220_v17 }
 0x3a5   : > { %2472 = vtanh.f32 %v1252_v26  ;;  %v3829_v26 = vld [vmem:[#allocation23_spill] sm:$0xff] }
 0x3a6   : > { %2474 = vpow2.f32 %v2221_v10  ;;  %v689_v27 = vadd.f32 %v3829_v26, %v3307_v43 }
 0x3ad   : > { %v2469_v24 = vpop.eup %2468 }
 0x3ae   : > { %v1262_v5 = vadd.f32 1.0, %v2469_v24  ;;  %v2471_v28 = vpop.eup %2470 }
 0x3af   : > { %v1263_v22 = vadd.f32 1.0, %v2471_v28  ;;  %v2473_v29 = vpop.eup %2472 }
 0x3b0   : > { %2476 = vrcp.f32 %v1262_v5  ;;  %v2475_v19 = vpop.eup %2474 }
 0x3b1   : > { %2478 = vrcp.f32 %v1263_v22  ;;  %v1264_v7 = vadd.f32 1.0, %v2475_v19 }
 0x3b3   : > { %2480 = vrcp.f32 %v1264_v7 }
 0x3ba   : > { %v2477_v20 = vpop.eup %2476 }
 0x3bb   : > { %v1274_v23 = vmul.f32 %v2477_v20, %v2473_v29  ;;  %v2479_v12 = vpop.eup %2478 }
 0x3bc   : > { %v1273_v32 = vmul.f32 %v2479_v12, %v3363_v11  ;;  %v3828_v11 = vld [vmem:[#allocation22_spill] sm:$0xff] }
 0x3bd   : > { %v2481_v14 = vpop.eup %2480  ;;  %v608_v18 = vadd.f32 %v3828_v11, %v3305_v25 }
 0x3be   : > { %v3409_v13 = vadd.f32 %v1274_v23, %v1273_v32 }
 0x3c0   : > { %2482 = vtanh.f32 %v3409_v13 }
 0x3ca   : > { %v2483_v0 = vpop.eup %2482 }
 0x3cb   : > { %v1277_v21 = vmul.f32 %v2483_v0, %v2481_v14 }
 0x3cd   : > { %v1278_v15 = vpack.c.bf16 %v1277_v21, %v1277_v21 }
 0x3cf   : > { %1280 = vst [vmem:[#allocation3] sm:$0xf] %v1278_v15  ;;  %1282 = vst [vmem:[#allocation11 + $0x8] sm:$0xf] %v1278_v15 }
 0x3d6   : > { %v1288_v30 = vld [vmem:[#allocation3] sm:$0xf] }
 0x3d7   : > { %1322 = vmatmul.mubr.bf16.vlgmr.msra.gmra.mrb[32].mxu0 %v1288_v30  ;;  %1363 = vmatmul.mubr.bf16.vlgmr.msra.gmra.mrb[32].mxu1 %v1288_v30 }
 0x3d8   : > { %1412 = vmatpush1.bf16.msra.mxu0 %v3081_v36  ;;  %1453 = vmatpush1.bf16.msra.mxu1 %v3089_v38 }
 0x3d9   : > { %1413 = vmatprep.subr.bf16.mxu0 %v3085_v37  ;;  %1454 = vmatprep.subr.bf16.mxu1 %v3092_v39 }
 0x3da   : > { %1443 = vmatprep.mubr.bf16.mxu0 %v3825_v31  ;;  %1484 = vmatprep.mubr.bf16.mxu1 %v3825_v31 }
 0x3dc   : > { %1414 = vmatpush1.bf16.msra.mxu0 %v3096_v40  ;;  %1455 = vmatpush1.bf16.msra.mxu1 %v3106_v42 }
 0x3dd   : > { %1415 = vmatprep.subr.bf16.mxu0 %v3102_v41  ;;  %1456 = vmatprep.subr.bf16.mxu1 %v3119_v46 }
 0x3e0   : > { %1416 = vmatpush1.bf16.msra.mxu0 %v3111_v44  ;;  %1457 = vmatpush1.bf16.msra.mxu1 %v3122_v47 }
 0x3e1   : > { %1417 = vmatprep.subr.bf16.mxu0 %v3115_v45  ;;  %1458 = vmatprep.subr.bf16.mxu1 %v3130_v49 }
 0x3e4   : > { %1418 = vmatpush1.bf16.msra.mxu0 %v3127_v48  ;;  %1459 = vmatpush1.bf16.msra.mxu1 %v3145_v53 }
 0x3e5   : > { %1419 = vmatprep.subr.bf16.mxu0 %v3135_v50  ;;  %1460 = vmatprep.subr.bf16.mxu1 %v3149_v54 }
 0x3e8   : > { %1420 = vmatpush1.bf16.msra.mxu0 %v3142_v52  ;;  %1461 = vmatpush1.bf16.msra.mxu1 %v3157_v56 }
 0x3e9   : > { %1421 = vmatprep.subr.bf16.mxu0 %v3152_v55  ;;  %1462 = vmatprep.subr.bf16.mxu1 %v3165_v58 }
 0x3ec   : > { %1422 = vmatpush1.bf16.msra.mxu0 %v3160_v57  ;;  %1463 = vmatpush1.bf16.msra.mxu1 %v3175_v61 }
 0x3ed   : > { %1423 = vmatprep.subr.bf16.mxu0 %v3168_v59  ;;  %1464 = vmatprep.subr.bf16.mxu1 %v3183_v63 }
 0x3f0   : > { %1424 = vmatpush1.bf16.msra.mxu0 %v3180_v62  ;;  %1465 = vmatpush1.bf16.msra.mxu1 %v3191_v2 }
 0x3f1   : > { %1425 = vmatprep.subr.bf16.mxu0 %v3186_v1  ;;  %1466 = vmatprep.subr.bf16.mxu1 %v3199_v4 }
 0x3f4   : > { %1426 = vmatpush1.bf16.msra.mxu0 %v3196_v3  ;;  %1467 = vmatpush1.bf16.msra.mxu1 %v3205_v6 }
 0x3f5   : > { %1533 = vmatprep.subr.bf16.mxu0 %v3075_v33  ;;  %1574 = vmatprep.subr.bf16.mxu1 %v3078_v34 }
 0x4aa   : > { %v1323_v17 = vpop.f32.mrb[32].mxu0  ;;  %v1364_v10 = vpop.f32.mrb[32].mxu1 }
 0x4ab   : > { %v1371_v24 = vadd.f32 %v1323_v17, %v608_v18  ;;  %v1373_v5 = vadd.f32 %v1364_v10, %v689_v27  ;;  %v1325_v28 = vpop.f32.mrb[33].mxu0  ;;  %v1366_v33 = vpop.f32.mrb[33].mxu1 }
 0x4ac   : > { %v1372_v22 = vadd.f32 %v1325_v28, %v610_v16  ;;  %v1374_v34 = vadd.f32 %v1366_v33, %v691_v9  ;;  %v1327_v29 = vpop.f32.mrb[34].mxu0  ;;  %v1368_v19 = vpop.f32.mrb[34].mxu1 }
 0x4ad   : > { %v2222_v20 = vmul.f32 -1.442695, %v1371_v24  ;;  %v1328_v23 = vpop.f32.mrb[35].mxu0  ;;  %v1369_v12 = vpop.f32.mrb[35].mxu1  ;;  %v2224_v32 = vmul.f32 -1.442695, %v1373_v5 }
 0x4ae   : > { %v2223_v7 = vmul.f32 -1.442695, %v1372_v22 }
 0x4af   : > { %2484 = vpow2.f32 %v2222_v20 }
 0x4b0   : > { %2486 = vpow2.f32 %v2223_v7 }
 0x4b1   : > { %2488 = vtanh.f32 %v1374_v34 }
 0x4b2   : > { %2490 = vpow2.f32 %v2224_v32 }
 0x4b9   : > { %v2485_v14 = vpop.eup %2484 }
 0x4ba   : > { %v1384_v0 = vadd.f32 1.0, %v2485_v14  ;;  %v2487_v21 = vpop.eup %2486 }
 0x4bb   : > { %v1385_v15 = vadd.f32 1.0, %v2487_v21  ;;  %v2489_v30 = vpop.eup %2488 }
 0x4bc   : > { %2492 = vrcp.f32 %v1384_v0  ;;  %v2491_v11 = vpop.eup %2490 }
 0x4bd   : > { %2494 = vrcp.f32 %v1385_v15  ;;  %v1386_v35 = vadd.f32 1.0, %v2491_v11 }
 0x4bf   : > { %2496 = vrcp.f32 %v1386_v35  ;;  %v3515_v35 = vld [vmem:[%s2982_s10 + $0x8] ss:$16 sps:$4 sm:$0xff]  }
 0x4c6   : > { %v2493_v18 = vpop.eup %2492 }
 0x4c7   : > { %v1396_v26 = vmul.f32 %v2493_v18, %v2489_v30  ;;  %v2495_v27 = vpop.eup %2494 }
 0x4c8   : > { %v1395_v16 = vmul.f32 %v2495_v27, %v3409_v13  ;;  %v3511_v27 = vld [vmem:[%s2982_s10] ss:$16 sps:$4 sm:$0xff]  }
 0x4c9   : > { %v2497_v9 = vpop.eup %2496 }
 0x4ca   : > { %v3455_v8 = vadd.f32 %v1396_v26, %v1395_v16  ;;  %v3519_v16 = vld [vmem:[%s2982_s10 + $0x24] ss:$16 sps:$4 sm:$0xff]  }
 0x4cc   : > { %2498 = vtanh.f32 %v3455_v8 }
 0x4d6   : > { %v2499_v17 = vpop.eup %2498 }
 0x4d7   : > { %v1399_v10 = vmul.f32 %v2499_v17, %v2497_v9  ;;  %v3529_v9 = vld [vmem:[%s2982_s10 + $0x20] ss:$16 sps:$4 sm:$0xff]   ;;  %v3533_v17 = vld [vmem:[%s2982_s10 + $0x28] ss:$16 sps:$4 sm:$0xff]  }
 0x4d9   : > { %v1400_v24 = vpack.c.bf16 %v1399_v10, %v1399_v10  ;;  %v3537_v10 = vld [vmem:[%s2982_s10 + $0x44] ss:$16 sps:$4 sm:$0xff]  }
 0x4db   : > { %1404 = vst [vmem:[#allocation11 + $0xc] sm:$0xf] %v1400_v24  ;;  %1402 = vst [vmem:[#allocation3] sm:$0xf] %v1400_v24  ;;  %v3541_v24 = vld [vmem:[%s2982_s10 + $0x4c] ss:$16 sps:$4 sm:$0xff]  }
 0x4e2   : > { %v1410_v5 = vld [vmem:[#allocation3] sm:$0xf] }
 0x4e3   : > { %1444 = vmatmul.mubr.bf16.vlgmr.msra.gmra.mrb[36].mxu0 %v1410_v5  ;;  %1485 = vmatmul.mubr.bf16.vlgmr.msra.gmra.mrb[36].mxu1 %v1410_v5  ;;  %v3545_v5 = vld [vmem:[%s2982_s10 + $0x40] ss:$16 sps:$4 sm:$0xff]  }
 0x4e4   : > { %1534 = vmatpush1.bf16.msra.mxu0 %v3081_v36  ;;  %1575 = vmatpush1.bf16.msra.mxu1 %v3089_v38  ;;  %v3491_v36 = vld [vmem:[%s2982_s10 + $0x4] ss:$16 sps:$4 sm:$0xff]  }
 0x4e5   : > { %1535 = vmatprep.subr.bf16.mxu0 %v3085_v37  ;;  %1576 = vmatprep.subr.bf16.mxu1 %v3092_v39  ;;  %v3495_v37 = vld [vmem:[%s2982_s10 + $0xc] ss:$16 sps:$4 sm:$0xff]   ;;  %v3832_v38 = vld [vmem:[#allocation26_spill] sm:$0xff] }
 0x4e6   : > { %1565 = vmatprep.mubr.bf16.mxu0 %v3825_v31  ;;  %1606 = vmatprep.mubr.bf16.mxu1 %v3825_v31  ;;  %v614_v39 = vadd.f32 %v3832_v38, %v3305_v25  ;;  %v3549_v38 = vld [vmem:[%s2982_s10 + $0x48] ss:$16 sps:$4 sm:$0xff]  }
 0x4e8   : > { %1536 = vmatpush1.bf16.msra.mxu0 %v3096_v40  ;;  %1577 = vmatpush1.bf16.msra.mxu1 %v3106_v42  ;;  %v3833_v40 = vld [vmem:[#allocation27_spill] sm:$0xff]  ;;  %v3834_v42 = vld [vmem:[#allocation28_spill] sm:$0xff] }
 0x4e9   : > { %1537 = vmatprep.subr.bf16.mxu0 %v3102_v41  ;;  %1578 = vmatprep.subr.bf16.mxu1 %v3119_v46  ;;  %v695_v41 = vadd.f32 %v3833_v40, %v3307_v43  ;;  %v3557_v40 = vld [vmem:[%s2982_s10 + $0x6c] ss:$16 sps:$4 sm:$0xff]  }
 0x4ec   : > { %1538 = vmatpush1.bf16.msra.mxu0 %v3111_v44  ;;  %1579 = vmatpush1.bf16.msra.mxu1 %v3122_v47  ;;  %v616_v44 = vadd.f32 %v3834_v42, %v3309_v51  ;;  %v3565_v42 = vld [vmem:[%s2982_s10 + $0x68] ss:$16 sps:$4 sm:$0xff]  }
 0x4ed   : > { %1539 = vmatprep.subr.bf16.mxu0 %v3115_v45  ;;  %1580 = vmatprep.subr.bf16.mxu1 %v3130_v49  ;;  %v3835_v45 = vld [vmem:[#allocation29_spill] sm:$0xff] }
 0x4ee   : > { %v697_v46 = vadd.f32 %v3835_v45, %v3311_v60  ;;  %v3573_v45 = vld [vmem:[%s2982_s10 + $0x8c] ss:$16 sps:$4 sm:$0xff]  }
 0x4f0   : > { %1540 = vmatpush1.bf16.msra.mxu0 %v3127_v48  ;;  %1581 = vmatpush1.bf16.msra.mxu1 %v3145_v53 }
 0x4f1   : > { %1541 = vmatprep.subr.bf16.mxu0 %v3135_v50  ;;  %1582 = vmatprep.subr.bf16.mxu1 %v3149_v54 }
 0x4f4   : > { %1542 = vmatpush1.bf16.msra.mxu0 %v3142_v52  ;;  %1583 = vmatpush1.bf16.msra.mxu1 %v3157_v56 }
 0x4f5   : > { %1543 = vmatprep.subr.bf16.mxu0 %v3152_v55  ;;  %1584 = vmatprep.subr.bf16.mxu1 %v3165_v58 }
 0x4f8   : > { %1544 = vmatpush1.bf16.msra.mxu0 %v3160_v57  ;;  %1585 = vmatpush1.bf16.msra.mxu1 %v3175_v61 }
 0x4f9   : > { %1545 = vmatprep.subr.bf16.mxu0 %v3168_v59  ;;  %1586 = vmatprep.subr.bf16.mxu1 %v3183_v63 }
 0x4fc   : > { %1546 = vmatpush1.bf16.msra.mxu0 %v3180_v62  ;;  %1587 = vmatpush1.bf16.msra.mxu1 %v3191_v2 }
 0x4fd   : > { %1547 = vmatprep.subr.bf16.mxu0 %v3186_v1  ;;  %1588 = vmatprep.subr.bf16.mxu1 %v3199_v4 }
 0x500   : > { %1548 = vmatpush1.bf16.msra.mxu0 %v3196_v3  ;;  %1589 = vmatpush1.bf16.msra.mxu1 %v3205_v6 }
 0x501   : > { %1655 = vmatprep.subr.bf16.mxu0 %v3491_v36  ;;  %1696 = vmatprep.subr.bf16.mxu1 %v3495_v37 }
 0x5b6   : > { %v1445_v47 = vpop.f32.mrb[36].mxu0  ;;  %v1486_v48 = vpop.f32.mrb[36].mxu1 }
 0x5b7   : > { %v1493_v49 = vadd.f32 %v1445_v47, %v614_v39  ;;  %v1495_v50 = vadd.f32 %v1486_v48, %v695_v41  ;;  %v1447_v52 = vpop.f32.mrb[37].mxu0  ;;  %v1488_v53 = vpop.f32.mrb[37].mxu1  ;;  %v3553_v39 = vld [vmem:[%s2982_s10 + $0x64] ss:$16 sps:$4 sm:$0xff]   ;;  %v3561_v41 = vld [vmem:[%s2982_s10 + $0x60] ss:$16 sps:$4 sm:$0xff]  }
 0x5b8   : > { %v1494_v54 = vadd.f32 %v1447_v52, %v616_v44  ;;  %v1496_v55 = vadd.f32 %v1488_v53, %v697_v46  ;;  %v1449_v56 = vpop.f32.mrb[38].mxu0  ;;  %v1490_v57 = vpop.f32.mrb[38].mxu1  ;;  %v3569_v44 = vld [vmem:[%s2982_s10 + $0x84] ss:$16 sps:$4 sm:$0xff]   ;;  %v3577_v46 = vld [vmem:[%s2982_s10 + $0x80] ss:$16 sps:$4 sm:$0xff]  }
 0x5b9   : > { %v2225_v58 = vmul.f32 -1.442695, %v1493_v49  ;;  %v1450_v59 = vpop.f32.mrb[39].mxu0  ;;  %v1491_v13 = vpop.f32.mrb[39].mxu1  ;;  %v2227_v33 = vmul.f32 -1.442695, %v1495_v50 }
 0x5ba   : > { %v2226_v28 = vmul.f32 -1.442695, %v1494_v54  ;;  %v3581_v47 = vld [vmem:[%s2982_s10 + $0x88] ss:$16 sps:$4 sm:$0xff]   ;;  %v3585_v48 = vld [vmem:[%s2982_s10 + $0xa4] ss:$16 sps:$4 sm:$0xff]  }
 0x5bb   : > { %2500 = vpow2.f32 %v2225_v58  ;;  %v3589_v49 = vld [vmem:[%s2982_s10 + $0xac] ss:$16 sps:$4 sm:$0xff]   ;;  %v3593_v50 = vld [vmem:[%s2982_s10 + $0xa0] ss:$16 sps:$4 sm:$0xff]   ;;  %v3598_v52 = vld [vmem:[%s2982_s10 + $0xc4] ss:$16 sps:$4 sm:$0xff]  }
 0x5bc   : > { %2502 = vpow2.f32 %v2226_v28 }
 0x5bd   : > { %2504 = vtanh.f32 %v1496_v55 }
 0x5be   : > { %2506 = vpow2.f32 %v2227_v33 }
 0x5c5   : > { %v2501_v22 = vpop.eup %2500 }
 0x5c6   : > { %v1506_v34 = vadd.f32 1.0, %v2501_v22  ;;  %v2503_v29 = vpop.eup %2502 }
 0x5c7   : > { %v1507_v19 = vadd.f32 1.0, %v2503_v29  ;;  %v2505_v20 = vpop.eup %2504 }
 0x5c8   : > { %2508 = vrcp.f32 %v1506_v34  ;;  %v2507_v23 = vpop.eup %2506 }
 0x5c9   : > { %2510 = vrcp.f32 %v1507_v19  ;;  %v1508_v14 = vadd.f32 1.0, %v2507_v23 }
 0x5cb   : > { %2512 = vrcp.f32 %v1508_v14 }
 0x5d2   : > { %v2509_v12 = vpop.eup %2508 }
 0x5d3   : > { %v1518_v7 = vmul.f32 %v2509_v12, %v2505_v20  ;;  %v2511_v32 = vpop.eup %2510 }
 0x5d4   : > { %v1517_v0 = vmul.f32 %v2511_v32, %v3455_v8  ;;  %v3523_v8 = vld [vmem:[%s2982_s10 + $0x2c] ss:$16 sps:$4 sm:$0xff]  }
 0x5d5   : > { %v2513_v15 = vpop.eup %2512 }
 0x5d6   : > { %v3507_v21 = vadd.f32 %v1518_v7, %v1517_v0 }
 0x5d8   : > { %2514 = vtanh.f32 %v3507_v21 }
 0x5e2   : > { %v2515_v30 = vpop.eup %2514 }
 0x5e3   : > { %v1521_v11 = vmul.f32 %v2515_v30, %v2513_v15 }
 0x5e5   : > { %v1522_v18 = vpack.c.bf16 %v1521_v11, %v1521_v11 }
 0x5e7   : > { %1526 = vst [vmem:[#allocation11 + $0x10] sm:$0xf] %v1522_v18  ;;  %1524 = vst [vmem:[#allocation3] sm:$0xf] %v1522_v18 }
 0x5ee   : > { %v1532_v26 = vld [vmem:[#allocation3] sm:$0xf] }
 0x5ef   : > { %1566 = vmatmul.mubr.bf16.vlgmr.msra.gmra.mrb[40].mxu0 %v1532_v26  ;;  %1607 = vmatmul.mubr.bf16.vlgmr.msra.gmra.mrb[40].mxu1 %v1532_v26 }
 0x5f0   : > { %1656 = vmatpush1.bf16.msra.mxu0 %v3511_v27  ;;  %1697 = vmatpush1.bf16.msra.mxu1 %v3515_v35 }
 0x5f1   : > { %1657 = vmatprep.subr.bf16.mxu0 %v3519_v16  ;;  %1698 = vmatprep.subr.bf16.mxu1 %v3523_v8 }
 0x5f2   : > { %1687 = vmatprep.mubr.bf16.mxu0 %v3825_v31  ;;  %1728 = vmatprep.mubr.bf16.mxu1 %v3825_v31 }
 0x5f4   : > { %1658 = vmatpush1.bf16.msra.mxu0 %v3529_v9  ;;  %1699 = vmatpush1.bf16.msra.mxu1 %v3533_v17 }
 0x5f5   : > { %1659 = vmatprep.subr.bf16.mxu0 %v3537_v10  ;;  %1700 = vmatprep.subr.bf16.mxu1 %v3541_v24 }
 0x5f8   : > { %1660 = vmatpush1.bf16.msra.mxu0 %v3545_v5  ;;  %1701 = vmatpush1.bf16.msra.mxu1 %v3549_v38 }
 0x5f9   : > { %1661 = vmatprep.subr.bf16.mxu0 %v3553_v39  ;;  %1702 = vmatprep.subr.bf16.mxu1 %v3557_v40 }
 0x5fc   : > { %1662 = vmatpush1.bf16.msra.mxu0 %v3561_v41  ;;  %1703 = vmatpush1.bf16.msra.mxu1 %v3565_v42 }
 0x5fd   : > { %1663 = vmatprep.subr.bf16.mxu0 %v3569_v44  ;;  %1704 = vmatprep.subr.bf16.mxu1 %v3573_v45 }
 0x600   : > { %1664 = vmatpush1.bf16.msra.mxu0 %v3577_v46  ;;  %1705 = vmatpush1.bf16.msra.mxu1 %v3581_v47 }
 0x601   : > { %1665 = vmatprep.subr.bf16.mxu0 %v3585_v48  ;;  %1706 = vmatprep.subr.bf16.mxu1 %v3589_v49 }
 0x604   : > { %1666 = vmatpush1.bf16.msra.mxu0 %v3593_v50  ;;  %1707 = vmatpush1.bf16.msra.mxu1 %v3175_v61  ;;  %v3836_v61 = vld [vmem:[#allocation30_spill] sm:$0xff] }
 0x605   : > { %1667 = vmatprep.subr.bf16.mxu0 %v3598_v52  ;;  %1708 = vmatprep.subr.bf16.mxu1 %v3183_v63  ;;  %v618_v53 = vadd.f32 %v3836_v61, %v3305_v25  ;;  %v3837_v63 = vld [vmem:[#allocation31_spill] sm:$0xff] }
 0x608   : > { %1668 = vmatpush1.bf16.msra.mxu0 %v3180_v62  ;;  %1709 = vmatpush1.bf16.msra.mxu1 %v3191_v2  ;;  %v699_v62 = vadd.f32 %v3837_v63, %v3307_v43  ;;  %v3838_v2 = vld [vmem:[#allocation32_spill] sm:$0xff] }
 0x609   : > { %1669 = vmatprep.subr.bf16.mxu0 %v3186_v1  ;;  %1710 = vmatprep.subr.bf16.mxu1 %v3199_v4  ;;  %v620_v54 = vadd.f32 %v3838_v2, %v3309_v51  ;;  %v3839_v1 = vld [vmem:[#allocation33_spill] sm:$0xff] }
 0x60a   : > { %v701_v4 = vadd.f32 %v3839_v1, %v3311_v60  ;;  %v3651_v1 = vld [vmem:[%s2982_s10 + $0xcc] ss:$16 sps:$4 sm:$0xff]  }
 0x60c   : > { %1670 = vmatpush1.bf16.msra.mxu0 %v3196_v3  ;;  %1711 = vmatpush1.bf16.msra.mxu1 %v3205_v6 }
 0x60d   : > { %1777 = vmatprep.subr.bf16.mxu0 %v3491_v36  ;;  %1818 = vmatprep.subr.bf16.mxu1 %v3495_v37 }
 0x6c2   : > { %v1567_v55 = vpop.f32.mrb[40].mxu0  ;;  %v1608_v3 = vpop.f32.mrb[40].mxu1 }
 0x6c3   : > { %v1615_v56 = vadd.f32 %v1567_v55, %v618_v53  ;;  %v1617_v6 = vadd.f32 %v1608_v3, %v699_v62  ;;  %v1569_v57 = vpop.f32.mrb[41].mxu0  ;;  %v1610_v58 = vpop.f32.mrb[41].mxu1  ;;  %v3659_v55 = vld [vmem:[%s2982_s10 + $0xc8] ss:$16 sps:$4 sm:$0xff]   ;;  %v3663_v3 = vld [vmem:[%s2982_s10 + $0xe4] ss:$16 sps:$4 sm:$0xff]  }
 0x6c4   : > { %v1616_v59 = vadd.f32 %v1569_v57, %v620_v54  ;;  %v1618_v13 = vadd.f32 %v1610_v58, %v701_v4  ;;  %v1571_v28 = vpop.f32.mrb[42].mxu0  ;;  %v1612_v33 = vpop.f32.mrb[42].mxu1  ;;  %v3655_v4 = vld [vmem:[%s2982_s10 + $0xc0] ss:$16 sps:$4 sm:$0xff]   ;;  %v3675_v57 = vld [vmem:[%s2982_s10 + $0xe8] ss:$16 sps:$4 sm:$0xff]  }
 0x6c5   : > { %v2228_v22 = vmul.f32 -1.442695, %v1615_v56  ;;  %v1572_v34 = vpop.f32.mrb[43].mxu0  ;;  %v1613_v29 = vpop.f32.mrb[43].mxu1  ;;  %v2230_v20 = vmul.f32 -1.442695, %v1617_v6 }
 0x6c6   : > { %v2229_v19 = vmul.f32 -1.442695, %v1616_v59  ;;  %v3667_v56 = vld [vmem:[%s2982_s10 + $0xec] ss:$16 sps:$4 sm:$0xff]   ;;  %v3671_v6 = vld [vmem:[%s2982_s10 + $0xe0] ss:$16 sps:$4 sm:$0xff]  }
 0x6c7   : > { %2516 = vpow2.f32 %v2228_v22  ;;  %v3840_v58 = vld [vmem:[#allocation34_spill] sm:$0xff]  ;;  %v3842_v33 = vld [vmem:[#allocation36_spill] sm:$0xff]  ;;  %v3843_v34 = vld [vmem:[#allocation37_spill] sm:$0xff] }
 0x6c8   : > { %2518 = vpow2.f32 %v2229_v19  ;;  %v624_v59 = vadd.f32 %v3840_v58, %v3305_v25  ;;  %v626_v22 = vadd.f32 %v3842_v33, %v3309_v51  ;;  %v707_v29 = vadd.f32 %v3843_v34, %v3311_v60 }
 0x6c9   : > { %2520 = vtanh.f32 %v1618_v13  ;;  %v3841_v13 = vld [vmem:[#allocation35_spill] sm:$0xff] }
 0x6ca   : > { %2522 = vpow2.f32 %v2230_v20  ;;  %v705_v28 = vadd.f32 %v3841_v13, %v3307_v43 }
 0x6d1   : > { %v2517_v23 = vpop.eup %2516 }
 0x6d2   : > { %v1628_v12 = vadd.f32 1.0, %v2517_v23  ;;  %v2519_v7 = vpop.eup %2518 }
 0x6d3   : > { %v1629_v32 = vadd.f32 1.0, %v2519_v7  ;;  %v2521_v14 = vpop.eup %2520 }
 0x6d4   : > { %2524 = vrcp.f32 %v1628_v12  ;;  %v2523_v0 = vpop.eup %2522 }
 0x6d5   : > { %2526 = vrcp.f32 %v1629_v32  ;;  %v1630_v18 = vadd.f32 1.0, %v2523_v0 }
 0x6d7   : > { %2528 = vrcp.f32 %v1630_v18 }
 0x6de   : > { %v2525_v15 = vpop.eup %2524 }
 0x6df   : > { %v1640_v30 = vmul.f32 %v2525_v15, %v2521_v14  ;;  %v2527_v11 = vpop.eup %2526 }
 0x6e0   : > { %v1639_v26 = vmul.f32 %v2527_v11, %v3507_v21  ;;  %v3646_v21 = vld [vmem:[%s2982_s10 + $0xa8] ss:$16 sps:$4 sm:$0xff]  }
 0x6e1   : > { %v2529_v53 = vpop.eup %2528 }
 0x6e2   : > { %v3619_v61 = vadd.f32 %v1640_v30, %v1639_v26 }
 0x6e4   : > { %2530 = vtanh.f32 %v3619_v61 }
 0x6ee   : > { %v2531_v63 = vpop.eup %2530 }
 0x6ef   : > { %v1643_v62 = vmul.f32 %v2531_v63, %v2529_v53 }
 0x6f1   : > { %v1644_v2 = vpack.c.bf16 %v1643_v62, %v1643_v62 }
 0x6f3   : > { %1648 = vst [vmem:[#allocation11 + $0x14] sm:$0xf] %v1644_v2  ;;  %1646 = vst [vmem:[#allocation3] sm:$0xf] %v1644_v2 }
 0x6fa   : > { %v1654_v54 = vld [vmem:[#allocation3] sm:$0xf] }
 0x6fb   : > { %1688 = vmatmul.mubr.bf16.vlgmr.msra.gmra.mrb[44].mxu0 %v1654_v54  ;;  %1729 = vmatmul.mubr.bf16.vlgmr.msra.gmra.mrb[44].mxu1 %v1654_v54 }
 0x6fc   : > { %1778 = vmatpush1.bf16.msra.mxu0 %v3511_v27  ;;  %1819 = vmatpush1.bf16.msra.mxu1 %v3515_v35 }
 0x6fd   : > { %1779 = vmatprep.subr.bf16.mxu0 %v3519_v16  ;;  %1820 = vmatprep.subr.bf16.mxu1 %v3523_v8 }
 0x6fe   : > { %1809 = vmatprep.mubr.bf16.mxu0 %v3825_v31  ;;  %1850 = vmatprep.mubr.bf16.mxu1 %v3825_v31 }
 0x700   : > { %1780 = vmatpush1.bf16.msra.mxu0 %v3529_v9  ;;  %1821 = vmatpush1.bf16.msra.mxu1 %v3533_v17 }
 0x701   : > { %1781 = vmatprep.subr.bf16.mxu0 %v3537_v10  ;;  %1822 = vmatprep.subr.bf16.mxu1 %v3541_v24 }
 0x704   : > { %1782 = vmatpush1.bf16.msra.mxu0 %v3545_v5  ;;  %1823 = vmatpush1.bf16.msra.mxu1 %v3549_v38 }
 0x705   : > { %1783 = vmatprep.subr.bf16.mxu0 %v3553_v39  ;;  %1824 = vmatprep.subr.bf16.mxu1 %v3557_v40 }
 0x708   : > { %1784 = vmatpush1.bf16.msra.mxu0 %v3561_v41  ;;  %1825 = vmatpush1.bf16.msra.mxu1 %v3565_v42 }
 0x709   : > { %1785 = vmatprep.subr.bf16.mxu0 %v3569_v44  ;;  %1826 = vmatprep.subr.bf16.mxu1 %v3573_v45 }
 0x70c   : > { %1786 = vmatpush1.bf16.msra.mxu0 %v3577_v46  ;;  %1827 = vmatpush1.bf16.msra.mxu1 %v3581_v47 }
 0x70d   : > { %1787 = vmatprep.subr.bf16.mxu0 %v3585_v48  ;;  %1828 = vmatprep.subr.bf16.mxu1 %v3589_v49 }
 0x710   : > { %1788 = vmatpush1.bf16.msra.mxu0 %v3593_v50  ;;  %1829 = vmatpush1.bf16.msra.mxu1 %v3646_v21 }
 0x711   : > { %1789 = vmatprep.subr.bf16.mxu0 %v3598_v52  ;;  %1830 = vmatprep.subr.bf16.mxu1 %v3651_v1 }
 0x714   : > { %1790 = vmatpush1.bf16.msra.mxu0 %v3655_v4  ;;  %1831 = vmatpush1.bf16.msra.mxu1 %v3659_v55 }
 0x715   : > { %1791 = vmatprep.subr.bf16.mxu0 %v3663_v3  ;;  %1832 = vmatprep.subr.bf16.mxu1 %v3667_v56 }
 0x718   : > { %1792 = vmatpush1.bf16.msra.mxu0 %v3671_v6  ;;  %1833 = vmatpush1.bf16.msra.mxu1 %v3675_v57 }
 0x719   : > { %1899 = vmatprep.subr.bf16.mxu0 %v3491_v36  ;;  %1940 = vmatprep.subr.bf16.mxu1 %v3495_v37 }
 0x7ce   : > { %v1689_v19 = vpop.f32.mrb[44].mxu0  ;;  %v1730_v20 = vpop.f32.mrb[44].mxu1 }
 0x7cf   : > { %v1737_v23 = vadd.f32 %v1689_v19, %v624_v59  ;;  %v1739_v12 = vadd.f32 %v1730_v20, %v705_v28  ;;  %v1691_v7 = vpop.f32.mrb[45].mxu0  ;;  %v1732_v36 = vpop.f32.mrb[45].mxu1 }
 0x7d0   : > { %v1738_v32 = vadd.f32 %v1691_v7, %v626_v22  ;;  %v1740_v37 = vadd.f32 %v1732_v36, %v707_v29  ;;  %v1693_v14 = vpop.f32.mrb[46].mxu0  ;;  %v1734_v0 = vpop.f32.mrb[46].mxu1 }
 0x7d1   : > { %v2231_v15 = vmul.f32 -1.442695, %v1737_v23  ;;  %v1694_v30 = vpop.f32.mrb[47].mxu0  ;;  %v1735_v11 = vpop.f32.mrb[47].mxu1  ;;  %v2233_v26 = vmul.f32 -1.442695, %v1739_v12 }
 0x7d2   : > { %v2232_v18 = vmul.f32 -1.442695, %v1738_v32 }
 0x7d3   : > { %2532 = vpow2.f32 %v2231_v15 }
 0x7d4   : > { %2534 = vpow2.f32 %v2232_v18 }
 0x7d5   : > { %2536 = vtanh.f32 %v1740_v37 }
 0x7d6   : > { %2538 = vpow2.f32 %v2233_v26 }
 0x7dd   : > { %v2533_v53 = vpop.eup %2532 }
 0x7de   : > { %v1750_v63 = vadd.f32 1.0, %v2533_v53  ;;  %v2535_v62 = vpop.eup %2534 }
 0x7df   : > { %v1751_v2 = vadd.f32 1.0, %v2535_v62  ;;  %v2537_v54 = vpop.eup %2536 }
 0x7e0   : > { %2540 = vrcp.f32 %v1750_v63  ;;  %v2539_v58 = vpop.eup %2538 }
 0x7e1   : > { %2542 = vrcp.f32 %v1751_v2  ;;  %v1752_v33 = vadd.f32 1.0, %v2539_v58 }
 0x7e3   : > { %2544 = vrcp.f32 %v1752_v33 }
 0x7ea   : > { %v2541_v59 = vpop.eup %2540 }
 0x7eb   : > { %v1762_v13 = vmul.f32 %v2541_v59, %v2537_v54  ;;  %v2543_v28 = vpop.eup %2542 }
 0x7ec   : > { %v1761_v22 = vmul.f32 %v2543_v28, %v3619_v61 }
 0x7ed   : > { %v2545_v29 = vpop.eup %2544 }
 0x7ee   : > { %v3689_v34 = vadd.f32 %v1762_v13, %v1761_v22 }
 0x7f0   : > { %2546 = vtanh.f32 %v3689_v34 }
 0x7fa   : > { %v2547_v19 = vpop.eup %2546 }
 0x7fb   : > { %v1765_v20 = vmul.f32 %v2547_v19, %v2545_v29 }
 0x7fd   : > { %v1766_v23 = vpack.c.bf16 %v1765_v20, %v1765_v20 }
 0x7ff   : > { %1770 = vst [vmem:[#allocation11 + $0x18] sm:$0xf] %v1766_v23  ;;  %1768 = vst [vmem:[#allocation3] sm:$0xf] %v1766_v23 }
 0x806   : > { %v1776_v12 = vld [vmem:[#allocation3] sm:$0xf] }
 0x807   : > { %1810 = vmatmul.mubr.bf16.vlgmr.msra.gmra.mrb[48].mxu0 %v1776_v12  ;;  %1851 = vmatmul.mubr.bf16.vlgmr.msra.gmra.mrb[48].mxu1 %v1776_v12 }
 0x808   : > { %1900 = vmatpush1.bf16.msra.mxu0 %v3511_v27  ;;  %1941 = vmatpush1.bf16.msra.mxu1 %v3515_v35  ;;  %v3845_v35 = vld [vmem:[#allocation39_spill] sm:$0xff] }
 0x809   : > { %1901 = vmatprep.subr.bf16.mxu0 %v3519_v16  ;;  %1942 = vmatprep.subr.bf16.mxu1 %v3523_v8  ;;  %v709_v16 = vadd.f32 %v3845_v35, %v3307_v43  ;;  %v3846_v8 = vld [vmem:[#allocation40_spill] sm:$0xff] }
 0x80a   : > { %1931 = vmatprep.mubr.bf16.mxu0 %v3825_v31  ;;  %1972 = vmatprep.mubr.bf16.mxu1 %v3825_v31  ;;  %v3844_v31 = vld [vmem:[#allocation38_spill] sm:$0xff] }
 0x80b   : > { %v628_v27 = vadd.f32 %v3844_v31, %v3305_v25 }
 0x80c   : > { %1902 = vmatpush1.bf16.msra.mxu0 %v3529_v9  ;;  %1943 = vmatpush1.bf16.msra.mxu1 %v3533_v17  ;;  %v630_v9 = vadd.f32 %v3846_v8, %v3309_v51  ;;  %v3847_v17 = vld [vmem:[#allocation41_spill] sm:$0xff] }
 0x80d   : > { %1903 = vmatprep.subr.bf16.mxu0 %v3537_v10  ;;  %1944 = vmatprep.subr.bf16.mxu1 %v3541_v24  ;;  %v711_v10 = vadd.f32 %v3847_v17, %v3311_v60 }
 0x810   : > { %1904 = vmatpush1.bf16.msra.mxu0 %v3545_v5  ;;  %1945 = vmatpush1.bf16.msra.mxu1 %v3549_v38 }
 0x811   : > { %1905 = vmatprep.subr.bf16.mxu0 %v3553_v39  ;;  %1946 = vmatprep.subr.bf16.mxu1 %v3557_v40 }
 0x814   : > { %1906 = vmatpush1.bf16.msra.mxu0 %v3561_v41  ;;  %1947 = vmatpush1.bf16.msra.mxu1 %v3565_v42 }
 0x815   : > { %1907 = vmatprep.subr.bf16.mxu0 %v3569_v44  ;;  %1948 = vmatprep.subr.bf16.mxu1 %v3573_v45 }
 0x818   : > { %1908 = vmatpush1.bf16.msra.mxu0 %v3577_v46  ;;  %1949 = vmatpush1.bf16.msra.mxu1 %v3581_v47 }
 0x819   : > { %1909 = vmatprep.subr.bf16.mxu0 %v3585_v48  ;;  %1950 = vmatprep.subr.bf16.mxu1 %v3589_v49 }
 0x81c   : > { %1910 = vmatpush1.bf16.msra.mxu0 %v3593_v50  ;;  %1951 = vmatpush1.bf16.msra.mxu1 %v3646_v21 }
 0x81d   : > { %1911 = vmatprep.subr.bf16.mxu0 %v3598_v52  ;;  %1952 = vmatprep.subr.bf16.mxu1 %v3651_v1 }
 0x820   : > { %1912 = vmatpush1.bf16.msra.mxu0 %v3655_v4  ;;  %1953 = vmatpush1.bf16.msra.mxu1 %v3659_v55 }
 0x821   : > { %1913 = vmatprep.subr.bf16.mxu0 %v3663_v3  ;;  %1954 = vmatprep.subr.bf16.mxu1 %v3667_v56 }
 0x824   : > { %1914 = vmatpush1.bf16.msra.mxu0 %v3671_v6  ;;  %1955 = vmatpush1.bf16.msra.mxu1 %v3675_v57 }
 0x8da   : > { %v1811_v24 = vpop.f32.mrb[48].mxu0  ;;  %v1852_v5 = vpop.f32.mrb[48].mxu1 }
 0x8db   : > { %v1859_v38 = vadd.f32 %v1811_v24, %v628_v27  ;;  %v1861_v39 = vadd.f32 %v1852_v5, %v709_v16  ;;  %v1813_v40 = vpop.f32.mrb[49].mxu0  ;;  %v1854_v41 = vpop.f32.mrb[49].mxu1 }
 0x8dc   : > { %v1860_v42 = vadd.f32 %v1813_v40, %v630_v9  ;;  %v1862_v44 = vadd.f32 %v1854_v41, %v711_v10  ;;  %v1815_v45 = vpop.f32.mrb[50].mxu0  ;;  %v1856_v46 = vpop.f32.mrb[50].mxu1 }
 0x8dd   : > { %v2234_v47 = vmul.f32 -1.442695, %v1859_v38  ;;  %v1816_v48 = vpop.f32.mrb[51].mxu0  ;;  %v1857_v49 = vpop.f32.mrb[51].mxu1  ;;  %v2236_v52 = vmul.f32 -1.442695, %v1861_v39 }
 0x8de   : > { %v2235_v50 = vmul.f32 -1.442695, %v1860_v42 }
 0x8df   : > { %2548 = vpow2.f32 %v2234_v47 }
 0x8e0   : > { %2550 = vpow2.f32 %v2235_v50 }
 0x8e1   : > { %2552 = vtanh.f32 %v1862_v44 }
 0x8e2   : > { %2554 = vpow2.f32 %v2236_v52 }
 0x8e9   : > { %v2549_v61 = vpop.eup %2548 }
 0x8ea   : > { %v1872_v21 = vadd.f32 1.0, %v2549_v61  ;;  %v2551_v1 = vpop.eup %2550 }
 0x8eb   : > { %v1873_v4 = vadd.f32 1.0, %v2551_v1  ;;  %v2553_v55 = vpop.eup %2552 }
 0x8ec   : > { %2556 = vrcp.f32 %v1872_v21  ;;  %v2555_v3 = vpop.eup %2554 }
 0x8ed   : > { %2558 = vrcp.f32 %v1873_v4  ;;  %v1874_v7 = vadd.f32 1.0, %v2555_v3 }
 0x8ef   : > { %2560 = vrcp.f32 %v1874_v7 }
 0x8f6   : > { %v2557_v56 = vpop.eup %2556 }
 0x8f7   : > { %v1884_v6 = vmul.f32 %v2557_v56, %v2553_v55  ;;  %v2559_v57 = vpop.eup %2558 }
 0x8f8   : > { %v1883_v36 = vmul.f32 %v2559_v57, %v3689_v34 }
 0x8f9   : > { %v2561_v37 = vpop.eup %2560 }
 0x8fa   : > { %v1885_v32 = vadd.f32 %v1884_v6, %v1883_v36 }
 0x8fc   : > { %2562 = vtanh.f32 %v1885_v32 }
 0x906   : > { %v2563_v14 = vpop.eup %2562 }
 0x907   : > { %v1887_v0 = vmul.f32 %v2563_v14, %v2561_v37 }
 0x909   : > { %v1888_v15 = vpack.c.bf16 %v1887_v0, %v1887_v0 }
 0x90b   : > { %1892 = vst [vmem:[#allocation11 + $0x1c] sm:$0xf] %v1888_v15  ;;  %1890 = vst [vmem:[#allocation3] sm:$0xf] %v1888_v15 }
 0x912   : > { %v1898_v30 = vld [vmem:[#allocation3] sm:$0xf] }
 0x913   : > { %1932 = vmatmul.mubr.bf16.vlgmr.msra.gmra.mrb[16].mxu0 %v1898_v30  ;;  %1973 = vmatmul.mubr.bf16.vlgmr.msra.gmra.mrb[16].mxu1 %v1898_v30 }
 0x9e6   : > { %v1933_v11 = vpop.f32.mrb[16].mxu0  ;;  %v1974_v18 = vpop.f32.mrb[16].mxu1 }
 0x9e7   : > { %v2247_v26 = vadd.f32 %v1933_v11, %v3305_v25  ;;  %v1935_v53 = vpop.f32.mrb[17].mxu0  ;;  %v1976_v63 = vpop.f32.mrb[17].mxu1  ;;  %v2249_v33 = vadd.f32 %v1974_v18, %v3307_v43 }
 0x9e8   : > { %v2248_v62 = vadd.f32 %v1935_v53, %v3309_v51  ;;  %v1937_v2 = vpop.f32.mrb[18].mxu0  ;;  %v1978_v54 = vpop.f32.mrb[18].mxu1  ;;  %v2250_v22 = vadd.f32 %v1976_v63, %v3311_v60 }
 0x9e9   : > { %v2237_v58 = vmul.f32 -1.442695, %v2247_v26  ;;  %v1938_v59 = vpop.f32.mrb[19].mxu0  ;;  %v1979_v13 = vpop.f32.mrb[19].mxu1  ;;  %v2239_v34 = vmul.f32 -1.442695, %v2249_v33 }
 0x9ea   : > { %v2238_v28 = vmul.f32 -1.442695, %v2248_v62 }
 0x9eb   : > { %2564 = vpow2.f32 %v2237_v58 }
 0x9ec   : > { %2566 = vpow2.f32 %v2238_v28 }
 0x9ed   : > { %2568 = vtanh.f32 %v2250_v22 }
 0x9ee   : > { %2570 = vpow2.f32 %v2239_v34 }
 0x9f5   : > { %v2565_v29 = vpop.eup %2564 }
 0x9f6   : > { %v1994_v19 = vadd.f32 1.0, %v2565_v29  ;;  %v2567_v25 = vpop.eup %2566 }
 0x9f7   : > { %v1995_v51 = vadd.f32 1.0, %v2567_v25  ;;  %v2569_v20 = vpop.eup %2568 }
 0x9f8   : > { %2572 = vrcp.f32 %v1994_v19  ;;  %v2571_v23 = vpop.eup %2570 }
 0x9f9   : > { %2574 = vrcp.f32 %v1995_v51  ;;  %v1996_v27 = vadd.f32 1.0, %v2571_v23 }
 0x9fb   : > { %2576 = vrcp.f32 %v1996_v27 }
 0xa02   : > { %v2573_v12 = vpop.eup %2572 }
 0xa03   : > { %v2006_v31 = vmul.f32 %v2573_v12, %v2569_v20  ;;  %v2575_v43 = vpop.eup %2574 }
 0xa04   : > { %v2005_v60 = vmul.f32 %v2575_v43, %v1885_v32 }
 0xa05   : > { %v2577_v16 = vpop.eup %2576 }
 0xa06   : > { %v2007_v35 = vadd.f32 %v2006_v31, %v2005_v60 }
 0xa08   : > { %2578 = vtanh.f32 %v2007_v35 }
 0xa12   : > { %v2579_v8 = vpop.eup %2578 }
 0xa13   : > { %v2009_v9 = vmul.f32 %v2579_v8, %v2577_v16 }
 0xa15   : > { %v2010_v17 = vpack.c.bf16 %v2009_v9, %v2009_v9 }
 0xa17   : > { %2012 = vst [vmem:[#allocation3] sm:$0xf] %v2010_v17  ;;  %2014 = vst [vmem:[#allocation11 + $0x20] sm:$0xf] %v2010_v17 }
 0xa18   : > { %2711 = shalt.err (!%p2708_p8)
}
 0xa19   : > { %s2712_s24 = scalar_lea.hbm %s3793_s4, 576 }
 0xa1a   : > { %p2713_p1 = scmp.ne.s32.totalorder %s3793_s4, %s2712_s24  ;;  %p2718_p3 = scmp.lt.u32.totalorder %s2712_s24, %s3793_s4 }
 0xa1c   : > { %p2714_p2 = pnand %p2713_p1, %p3739_p9 }
 0xa1e   : > { %p2715_p13 = pneg %p2714_p2 }
 0xa20   : > { %p2720_p5 = pnand %p2718_p3, %p2715_p13 }
 0xa22   : > { %2723 = shalt.err (!%p2720_p5)
}
 0xa23   : > { %s2794_s30 = smov 64   ;;  %s2795_s26 = smov 4  }
 0xa24   : > { %2267 = dma.vmem_to_hbm [thread:$0]  (%p3739_p9), %s2991_s14, 576, %s3793_s4, [#allocation8], %s2794_s30, %s2794_s30, %s2795_s26  }
 0xa25   : > { %2761 = dma.done.wait (%p3739_p9), [#allocation8], 576  }
 0xa26   : > { %2763 = vsyncadd (%p3739_p9), [#allocation8], 4294966720 }
 0xa27 PF: > { %s21_s20 = sadd.s32 1, %s2786_s20   ;;  %s3849_s15 = smov %s2770_s16 }
 0xa28   : > { %p18_p6 = scmp.ge.s32.totalorder %s21_s20, 4   ;;  %s3850_s16 = smov %s2774_s17 }
 0xa29   : > { %s3851_s17 = smov %s2872_s27  ;;  %s3852_s18 = smov %s2782_s19 }
 0xa2a   : > { %s3853_s19 = smov %s3855_s22  ;;  %20 = sbr.rel (!%p18_p6) target bundleno = 7 (0x7), region = 111 }
 0xa31   :  { %2039 = vsyncpa [#allocation7], 1 }
 0xa32   :  { %2041 = vsyncpa [#allocation7 + $0x1], 1 }
 0xa33   :  { %2042 = vsyncpa [#allocation10], 1 }
 0xa34   :  { %2044 = vsyncpa [#allocation10 + $0x1], 1 }
 0xa35   :  { %2045 = vsyncpa [#allocation8], 1 }
 0xa36   :  { %2047 = vsyncpa [#allocation8 + $0x1], 1 }
 0xa37   :  { %2048 = vsyncmov [#allocation5] }
 0xa3a   :  { %s2049_s14 = vpop.sfrf %2048 }
 0xa3b   :  { %p2244_p10 = scmp.ne.s32.totalorder %s2049_s14, 0 }
 0xa3d   :  { %2053 = shalt.err (%p2244_p10)  }

</bundles_post_ra>
